<compile_context>
chip_gen: v6e
topology: v6e:2x2x1
jax: 0.10.0
libtpu: 0.0.40
codegen_flags: <defaults>
</compile_context>

<pallas_src>
import functools

import jax
import jax.numpy as jnp
from jax import lax
from jax.experimental import pallas as pl
from jax.experimental.pallas import tpu as pltpu

EPS = 1e-5  # nn.BatchNorm2d default


# --------------------------- kernel helpers ---------------------------------

def _zero_halo(pad_ref):
    """Zero only the 1-pixel halo of the (Ho+2, Wo+2, C) padded scratch."""
    Hp, Wp, C = pad_ref.shape
    dt = pad_ref.dtype
    pad_ref[0, :, :] = jnp.zeros((Wp, C), dt)
    pad_ref[Hp - 1, :, :] = jnp.zeros((Wp, C), dt)
    pad_ref[:, 0:1, :] = jnp.zeros((Hp, 1, C), dt)
    pad_ref[:, Wp - 1:Wp, :] = jnp.zeros((Hp, 1, C), dt)


def _im2col_to_scratch(pad_ref, cols_ref, Ho, Wo):
    """Write the 9 shifted 3x3 taps straight into the (Ho*Wo, 9*C) scratch."""
    C = pad_ref.shape[-1]
    t = 0
    for dy in range(3):
        for dx in range(3):
            cols_ref[:, t * C:(t + 1) * C] = (
                pad_ref[dy:dy + Ho, dx:dx + Wo, :].reshape(Ho * Wo, C))
            t += 1


# ------------------------------- kernels -------------------------------------

def _pool_conv1_kernel(x_ref, w_ref, y_ref, st_ref, pad_ref, cols_ref):
    # x_ref : (1, Ho, 2, Wo, 2*Cin) compute dtype (H split (Ho,2), (W,C) merged)
    # w_ref : (9*Cin, Cout)          im2col conv1 weights (compute dtype)
    # y_ref : (1, Ho*Wo, Cout)       raw (pre-BN) conv1 output, compute dtype
    # st_ref: (1, 2, Cout)           per-sample [sum, sum_sq] of conv1 output (f32)
    _, Ho, _, Wo, C2 = x_ref.shape
    Cin = C2 // 2

    # Scratch persists across (sequential) grid steps; halo never changes.
    @pl.when(pl.program_id(0) == 0)
    def _():
        _zero_halo(pad_ref)

    # MaxPool2d(2): H pairs then W pairs (static slices only).
    xm = jnp.maximum(x_ref[0, :, 0, :, :], x_ref[0, :, 1, :, :])
    pooled = jnp.maximum(xm[:, :, :Cin], xm[:, :, Cin:])          # (Ho, Wo, Cin)
    pad_ref[1:Ho + 1, 1:Wo + 1, :] = pooled

    _im2col_to_scratch(pad_ref, cols_ref, Ho, Wo)

    # Single MXU matmul with f32 accumulation; stats from the f32 accumulator.
    y = jnp.dot(cols_ref[...], w_ref[...], preferred_element_type=jnp.float32)
    s1 = jnp.sum(y, axis=0, keepdims=True)
    s2 = jnp.sum(y * y, axis=0, keepdims=True)
    st_ref[0] = jnp.concatenate([s1, s2], axis=0)
    y_ref[0] = y.astype(y_ref.dtype)


def _bn_relu_conv2_kernel(y1_ref, sc_ref, sh_ref, w_ref, y_ref, st_ref,
                          pad_ref, cols_ref):
    # y1_ref: (1, Ho*Wo, Cout)  raw conv1 output (compute dtype)
    # sc/sh : (1, Cout) f32     folded BN1 scale/shift
    # w_ref : (Cout, 9*Cout)    conv2 weights, transposed im2col layout
    # y_ref : (1, Cout, Ho*Wo)  lane-dense conv2 output (compute dtype)
    # st_ref: (1, Cout, 2) f32  per-sample [sum, sum_sq] per channel
    Ho = pad_ref.shape[0] - 2
    Wo = pad_ref.shape[1] - 2
    C = pad_ref.shape[-1]

    @pl.when(pl.program_id(0) == 0)
    def _():
        _zero_halo(pad_ref)

    # BN1 + ReLU in f32 (v5e has no bf16 VALU), cast only the MXU operand.
    h = jnp.maximum(y1_ref[0].astype(jnp.float32) * sc_ref[...] + sh_ref[...],
                    0.0)
    pad_ref[1:Ho + 1, 1:Wo + 1, :] = h.reshape(Ho, Wo, C).astype(pad_ref.dtype)

    _im2col_to_scratch(pad_ref, cols_ref, Ho, Wo)

    # (Cout, 9C) @ (Ho*Wo, 9C)^T -> (Cout, Ho*Wo): lane-dense result, and the
    # final NCHW output becomes a pure reshape downstream.
    yT = lax.dot_general(w_ref[...], cols_ref[...],
                         (((1,), (1,)), ((), ())),
                         preferred_element_type=jnp.float32)
    s1 = jnp.sum(yT, axis=1, keepdims=True)
    s2 = jnp.sum(yT * yT, axis=1, keepdims=True)
    st_ref[0] = jnp.concatenate([s1, s2], axis=1)
    y_ref[0] = yT.astype(y_ref.dtype)


def _bn_relu_out_kernel(y2_ref, sc_ref, sh_ref, o_ref):
    # y2_ref: (1, Cout, Ho*Wo); sc/sh: (Cout, 1); o_ref: (1, Cout, Ho*Wo)
    o_ref[0] = jnp.maximum(
        y2_ref[0].astype(jnp.float32) * sc_ref[...] + sh_ref[...],
        0.0).astype(o_ref.dtype)


# ------------------------------- wrapper --------------------------------------

def _fold_bn_rows(stats, gamma, beta, count):
    """stats (N, 2, C) -> folded BN scale/shift of shape (1, C), f32."""
    s = jnp.sum(stats, axis=0)
    mean = s[0] / count
    var = jnp.maximum(s[1] / count - mean * mean, 0.0)   # biased variance
    scale = gamma * lax.rsqrt(var + EPS)
    shift = beta - mean * scale
    return scale[None, :].astype(jnp.float32), shift[None, :].astype(jnp.float32)


def _fold_bn_cols(stats, gamma, beta, count):
    """stats (N, C, 2) -> folded BN scale/shift of shape (C, 1), f32."""
    s = jnp.sum(stats, axis=0)
    mean = s[:, 0] / count
    var = jnp.maximum(s[:, 1] / count - mean * mean, 0.0)
    scale = gamma * lax.rsqrt(var + EPS)
    shift = beta - mean * scale
    return scale[:, None].astype(jnp.float32), shift[:, None].astype(jnp.float32)


def _compiler_params(block_bytes, scratch_bytes):
    """Per-generation VMEM limit: needed bytes + headroom, capped at 3/4 VMEM."""
    try:
        cap = int(pltpu.get_tpu_info().vmem_capacity_bytes)
    except Exception:  # query unavailable -> assume smallest (v7x) VMEM
        cap = 64 * 1024 * 1024
    need = 2 * block_bytes + scratch_bytes + (4 << 20)   # double-buffered blocks
    limit = int(min(max(need, 32 << 20), (cap * 3) // 4))
    return pltpu.CompilerParams(
        # Sequential grid: the padded-scratch halo is zeroed only at step 0 and
        # reused from the persistent VMEM scratch on later steps.
        dimension_semantics=("arbitrary",),
        vmem_limit_bytes=limit,
    )


def down_forward(x_nchw, params, compute_dtype=jnp.bfloat16):
    """Down.forward: x (N, Cin, H, W) -> (N, Cout, H//2, W//2).

    compute_dtype feeds the MXU and the inter-pass intermediates; BN statistics
    and matmul accumulation stay in f32.
    """
    w1, w2, g1, b1, g2, b2 = params
    N, Cin, H, W = x_nchw.shape
    Cout = w1.shape[0]
    assert H % 2 == 0 and W % 2 == 0, "MaxPool2d(2): H and W must be even"
    Ho, Wo = H // 2, W // 2
    P = Ho * Wo
    count = N * P
    cdt = compute_dtype
    csz = jnp.dtype(cdt).itemsize

    # glue: layout / parameter plumbing
    x_nhwc = jnp.transpose(x_nchw, (0, 2, 3, 1))
    x_blk = x_nhwc.reshape(N, Ho, 2, Wo, 2 * Cin).astype(cdt)  # row-major reshape
    w1k = jnp.transpose(w1, (2, 3, 1, 0)).reshape(9 * Cin, Cout).astype(cdt)
    # conv2 weights pre-transposed to (Cout, 9*Cout): kernel computes W @ cols^T
    # so the result comes out channel-major (lane-dense).
    w2k = jnp.transpose(w2, (2, 3, 1, 0)).reshape(9 * Cout, Cout).T.astype(cdt)

    # ---- pass A: pool + conv1 + partial BN stats (grid over batch) ----
    blkA = ((Ho * 2 * Wo * 2 * Cin) * csz + 9 * Cin * Cout * csz
            + P * Cout * csz + 2 * Cout * 4)
    scrA = (Ho + 2) * (Wo + 2) * Cin * csz + P * 9 * Cin * csz
    y1, st1 = pl.pallas_call(
        _pool_conv1_kernel,
        grid=(N,),
        in_specs=[
            pl.BlockSpec((1, Ho, 2, Wo, 2 * Cin), lambda n: (n, 0, 0, 0, 0)),
            pl.BlockSpec((9 * Cin, Cout), lambda n: (0, 0)),
        ],
        out_specs=(
            pl.BlockSpec((1, P, Cout), lambda n: (n, 0, 0)),
            pl.BlockSpec((1, 2, Cout), lambda n: (n, 0, 0)),
        ),
        out_shape=(
            jax.ShapeDtypeStruct((N, P, Cout), cdt),
            jax.ShapeDtypeStruct((N, 2, Cout), jnp.float32),
        ),
        scratch_shapes=[
            pltpu.VMEM((Ho + 2, Wo + 2, Cin), cdt),
            pltpu.VMEM((P, 9 * Cin), cdt),
        ],
        compiler_params=_compiler_params(blkA, scrA),
    )(x_blk, w1k)

    scale1, shift1 = _fold_bn_rows(st1, g1, b1, count)

    # ---- pass B: BN1 + ReLU + conv2 + partial BN stats ----
    blkB = (P * Cout * csz + 2 * Cout * 4 + Cout * 9 * Cout * csz
            + Cout * P * csz + Cout * 2 * 4)
    scrB = (Ho + 2) * (Wo + 2) * Cout * csz + P * 9 * Cout * csz
    y2, st2 = pl.pallas_call(
        _bn_relu_conv2_kernel,
        grid=(N,),
        in_specs=[
            pl.BlockSpec((1, P, Cout), lambda n: (n, 0, 0)),
            pl.BlockSpec((1, Cout), lambda n: (0, 0)),
            pl.BlockSpec((1, Cout), lambda n: (0, 0)),
            pl.BlockSpec((Cout, 9 * Cout), lambda n: (0, 0)),
        ],
        out_specs=(
            pl.BlockSpec((1, Cout, P), lambda n: (n, 0, 0)),
            pl.BlockSpec((1, Cout, 2), lambda n: (n, 0, 0)),
        ),
        out_shape=(
            jax.ShapeDtypeStruct((N, Cout, P), cdt),
            jax.ShapeDtypeStruct((N, Cout, 2), jnp.float32),
        ),
        scratch_shapes=[
            pltpu.VMEM((Ho + 2, Wo + 2, Cout), cdt),
            pltpu.VMEM((P, 9 * Cout), cdt),
        ],
        compiler_params=_compiler_params(blkB, scrB),
    )(y1, scale1, shift1, w2k)

    scale2, shift2 = _fold_bn_cols(st2, g2, b2, count)

    # ---- pass C: BN2 + ReLU -> lane-dense channel-major output ----
    osz = jnp.dtype(x_nchw.dtype).itemsize
    blkC = Cout * P * csz + 2 * Cout * 4 + Cout * P * osz
    out_cm = pl.pallas_call(
        _bn_relu_out_kernel,
        grid=(N,),
        in_specs=[
            pl.BlockSpec((1, Cout, P), lambda n: (n, 0, 0)),
            pl.BlockSpec((Cout, 1), lambda n: (0, 0)),
            pl.BlockSpec((Cout, 1), lambda n: (0, 0)),
        ],
        out_specs=pl.BlockSpec((1, Cout, P), lambda n: (n, 0, 0)),
        out_shape=jax.ShapeDtypeStruct((N, Cout, P), x_nchw.dtype),
        compiler_params=_compiler_params(blkC, 0),
    )(y2, scale2, shift2)

    # Channel-major output -> NCHW is a pure reshape (no XLA transpose).
    return out_cm.reshape(N, Cout, Ho, Wo)


# ------------------------- params / reference --------------------------------

def init_params(key, in_channels, out_channels):
    """Deterministic parameter init (PyTorch-style shapes/scales)."""
    k1, k2 = jax.random.split(key)
    bound1 = 1.0 / float(in_channels * 9) ** 0.5
    bound2 = 1.0 / float(out_channels * 9) ** 0.5
    w1 = jax.random.uniform(k1, (out_channels, in_channels, 3, 3),
                            jnp.float32, -bound1, bound1)
    w2 = jax.random.uniform(k2, (out_channels, out_channels, 3, 3),
                            jnp.float32, -bound2, bound2)
    g1 = jnp.ones((out_channels,), jnp.float32)
    b1 = jnp.zeros((out_channels,), jnp.float32)
    g2 = jnp.ones((out_channels,), jnp.float32)
    b2 = jnp.zeros((out_channels,), jnp.float32)
    return w1, w2, g1, b1, g2, b2


def ref_forward(x, params):
    """Pure-JAX reference (same semantics) for correctness checking."""
    w1, w2, g1, b1, g2, b2 = params
    N, C, H, W = x.shape
    p = x.reshape(N, C, H // 2, 2, W // 2, 2).max(axis=(3, 5))

    def conv_bn_relu(h, w, g, b):
        y = lax.conv_general_dilated(
            h, w, window_strides=(1, 1), padding=((1, 1), (1, 1)),
            dimension_numbers=("NCHW", "OIHW", "NCHW"))
        mean = y.mean(axis=(0, 2, 3), keepdims=True)
        var = ((y - mean) ** 2).mean(axis=(0, 2, 3), keepdims=True)
        y = (y - mean) / jnp.sqrt(var + EPS)
        y = y * g.reshape(1, -1, 1, 1) + b.reshape(1, -1, 1, 1)
        return jnp.maximum(y, 0.0)

    h = conv_bn_relu(p, w1, g1, b1)
    return conv_bn_relu(h, w2, g2, b2)


if __name__ == "__main__":
    key = jax.random.PRNGKey(0)
    kx, kp = jax.random.split(key)
    N, Cin, Cout, H, W = 2, 4, 8, 16, 16

    x = jax.random.normal(kx, (N, Cin, H, W), jnp.float32)
    params = init_params(kp, Cin, Cout)
    ref = ref_forward(x, params)

    # f32 MXU / f32 intermediates: tight check against the f32 reference.
    fwd_f32 = jax.jit(functools.partial(down_forward, compute_dtype=jnp.float32))
    out_f32 = jax.block_until_ready(fwd_f32(x, params))
    assert out_f32.shape == (N, Cout, H // 2, W // 2), out_f32.shape
    err_f32 = float(jnp.max(jnp.abs(out_f32 - ref)))

    # bf16 MXU + bf16 intermediates fast path: looser tolerance vs f32 reference.
    fwd_bf16 = jax.jit(functools.partial(down_forward, compute_dtype=jnp.bfloat16))
    out_bf16 = jax.block_until_ready(fwd_bf16(x, params))
    err_bf16 = float(jnp.max(jnp.abs(out_bf16 - ref)))

    if err_f32 < 1e-3 and err_bf16 < 1e-1:
        print("KERNEL_OK")
    else:
        raise SystemExit(
            f"mismatch vs reference: f32 max|err|={err_f32}, bf16 max|err|={err_bf16}")
</pallas_src>

<mosaic_0001>
module attributes {stable_mosaic.version = 11 : i64} {
  func.func @_pool_conv1_kernel(%arg0: i32, %arg1: memref<1x8x2x8x8xf32, #tpu.memory_space<vmem>>, %arg2: memref<36x8xf32, #tpu.memory_space<vmem>>, %arg3: memref<1x64x8xf32, #tpu.memory_space<vmem>>, %arg4: memref<1x2x8xf32, #tpu.memory_space<vmem>>, %arg5: memref<10x10x4xf32, #tpu.memory_space<vmem>>, %arg6: memref<64x36xf32, #tpu.memory_space<vmem>>) attributes {dimension_semantics = [#tpu.dimension_semantics<arbitrary>], iteration_bounds = array<i64: 2>, scalar_prefetch = 0 : i64, scratch_operands = 2 : i64, tpu.core_type = #tpu.core_type<tc>, window_params = [{transform_indices = @transform_0, window_bounds = array<i64: 1, 8, 2, 8, 8>}, {pipeline_mode = #tpu.pipeline_mode<synchronous>, transform_indices = @transform_1, window_bounds = array<i64: 36, 8>}, {transform_indices = @transform_2, window_bounds = array<i64: 1, 64, 8>}, {transform_indices = @transform_3, window_bounds = array<i64: 1, 2, 8>}]} {
    %c0_i32 = arith.constant 0 : i32
    %0 = arith.cmpi eq, %arg0, %c0_i32 : i32
    %1 = arith.extui %0 : i1 to i32
    %c0_i32_0 = arith.constant 0 : i32
    %2 = arith.cmpi ne, %1, %c0_i32_0 : i32
    scf.if %2 {
      %cst_60 = arith.constant 0.000000e+00 : f32
      %54 = vector.broadcast %cst_60 : f32 to vector<10x4xf32>
      %c0_61 = arith.constant 0 : index
      %c0_62 = arith.constant 0 : index
      %c0_63 = arith.constant 0 : index
      %55 = vector.load %arg5[%c0_61, %c0_62, %c0_63] : memref<10x10x4xf32, #tpu.memory_space<vmem>>, vector<1x10x4xf32>
      %56 = vector.shape_cast %55 : vector<1x10x4xf32> to vector<10x4xf32>
      %57 = vector.shape_cast %54 : vector<10x4xf32> to vector<1x10x4xf32>
      tpu.vector_store %arg5[%c0_61, %c0_62, %c0_63], %57 {strides = array<i32>} : memref<10x10x4xf32, #tpu.memory_space<vmem>>, vector<1x10x4xf32>,
      %cst_64 = arith.constant 0.000000e+00 : f32
      %58 = vector.broadcast %cst_64 : f32 to vector<10x4xf32>
      %c9 = arith.constant 9 : index
      %c0_65 = arith.constant 0 : index
      %c0_66 = arith.constant 0 : index
      %59 = vector.load %arg5[%c9, %c0_65, %c0_66] : memref<10x10x4xf32, #tpu.memory_space<vmem>>, vector<1x10x4xf32>
      %60 = vector.shape_cast %59 : vector<1x10x4xf32> to vector<10x4xf32>
      %61 = vector.shape_cast %58 : vector<10x4xf32> to vector<1x10x4xf32>
      tpu.vector_store %arg5[%c9, %c0_65, %c0_66], %61 {strides = array<i32>} : memref<10x10x4xf32, #tpu.memory_space<vmem>>, vector<1x10x4xf32>,
      %cst_67 = arith.constant 0.000000e+00 : f32
      %62 = vector.broadcast %cst_67 : f32 to vector<10x1x4xf32>
      %c0_68 = arith.constant 0 : index
      %c0_69 = arith.constant 0 : index
      %c0_70 = arith.constant 0 : index
      %63 = vector.load %arg5[%c0_68, %c0_69, %c0_70] : memref<10x10x4xf32, #tpu.memory_space<vmem>>, vector<10x1x4xf32>
      tpu.vector_store %arg5[%c0_68, %c0_69, %c0_70], %62 {strides = array<i32>} : memref<10x10x4xf32, #tpu.memory_space<vmem>>, vector<10x1x4xf32>,
      %cst_71 = arith.constant 0.000000e+00 : f32
      %64 = vector.broadcast %cst_71 : f32 to vector<10x1x4xf32>
      %c0_72 = arith.constant 0 : index
      %c9_73 = arith.constant 9 : index
      %c0_74 = arith.constant 0 : index
      %65 = vector.load %arg5[%c0_72, %c9_73, %c0_74] : memref<10x10x4xf32, #tpu.memory_space<vmem>>, vector<10x1x4xf32>
      tpu.vector_store %arg5[%c0_72, %c9_73, %c0_74], %64 {strides = array<i32>} : memref<10x10x4xf32, #tpu.memory_space<vmem>>, vector<10x1x4xf32>,
    } else {
    }
    %c0 = arith.constant 0 : index
    %c0_1 = arith.constant 0 : index
    %c0_2 = arith.constant 0 : index
    %c0_3 = arith.constant 0 : index
    %c0_4 = arith.constant 0 : index
    %3 = vector.load %arg1[%c0, %c0_1, %c0_2, %c0_3, %c0_4] : memref<1x8x2x8x8xf32, #tpu.memory_space<vmem>>, vector<1x8x1x8x8xf32>
    %4 = vector.shape_cast %3 : vector<1x8x1x8x8xf32> to vector<8x8x8xf32>
    %c0_5 = arith.constant 0 : index
    %c0_6 = arith.constant 0 : index
    %c1 = arith.constant 1 : index
    %c0_7 = arith.constant 0 : index
    %c0_8 = arith.constant 0 : index
    %5 = vector.load %arg1[%c0_5, %c0_6, %c1, %c0_7, %c0_8] : memref<1x8x2x8x8xf32, #tpu.memory_space<vmem>>, vector<1x8x1x8x8xf32>
    %6 = vector.shape_cast %5 : vector<1x8x1x8x8xf32> to vector<8x8x8xf32>
    %7 = arith.maximumf %4, %6 : vector<8x8x8xf32>
    %8 = vector.extract_strided_slice %7 {offsets = [0, 0, 0], sizes = [8, 8, 4], strides = [1, 1, 1]} : vector<8x8x8xf32> to vector<8x8x4xf32>
    %9 = vector.extract_strided_slice %7 {offsets = [0, 0, 4], sizes = [8, 8, 4], strides = [1, 1, 1]} : vector<8x8x8xf32> to vector<8x8x4xf32>
    %10 = arith.maximumf %8, %9 : vector<8x8x4xf32>
    %c1_9 = arith.constant 1 : index
    %c1_10 = arith.constant 1 : index
    %c0_11 = arith.constant 0 : index
    %11 = vector.load %arg5[%c1_9, %c1_10, %c0_11] : memref<10x10x4xf32, #tpu.memory_space<vmem>>, vector<8x8x4xf32>
    tpu.vector_store %arg5[%c1_9, %c1_10, %c0_11], %10 {strides = array<i32>} : memref<10x10x4xf32, #tpu.memory_space<vmem>>, vector<8x8x4xf32>,
    %c0_12 = arith.constant 0 : index
    %c0_13 = arith.constant 0 : index
    %c0_14 = arith.constant 0 : index
    %12 = vector.load %arg5[%c0_12, %c0_13, %c0_14] : memref<10x10x4xf32, #tpu.memory_space<vmem>>, vector<8x8x4xf32>
    %13 = vector.shape_cast %12 : vector<8x8x4xf32> to vector<64x4xf32>
    %c0_15 = arith.constant 0 : index
    %c0_16 = arith.constant 0 : index
    %14 = vector.load %arg6[%c0_15, %c0_16] : memref<64x36xf32, #tpu.memory_space<vmem>>, vector<64x4xf32>
    tpu.vector_store %arg6[%c0_15, %c0_16], %13 {strides = array<i32>} : memref<64x36xf32, #tpu.memory_space<vmem>>, vector<64x4xf32>,
    %c0_17 = arith.constant 0 : index
    %c1_18 = arith.constant 1 : index
    %c0_19 = arith.constant 0 : index
    %15 = vector.load %arg5[%c0_17, %c1_18, %c0_19] : memref<10x10x4xf32, #tpu.memory_space<vmem>>, vector<8x8x4xf32>
    %16 = vector.shape_cast %15 : vector<8x8x4xf32> to vector<64x4xf32>
    %c0_20 = arith.constant 0 : index
    %c4 = arith.constant 4 : index
    %17 = vector.load %arg6[%c0_20, %c4] : memref<64x36xf32, #tpu.memory_space<vmem>>, vector<64x4xf32>
    tpu.vector_store %arg6[%c0_20, %c4], %16 {strides = array<i32>} : memref<64x36xf32, #tpu.memory_space<vmem>>, vector<64x4xf32>,
    %c0_21 = arith.constant 0 : index
    %c2 = arith.constant 2 : index
    %c0_22 = arith.constant 0 : index
    %18 = vector.load %arg5[%c0_21, %c2, %c0_22] : memref<10x10x4xf32, #tpu.memory_space<vmem>>, vector<8x8x4xf32>
    %19 = vector.shape_cast %18 : vector<8x8x4xf32> to vector<64x4xf32>
    %c0_23 = arith.constant 0 : index
    %c8 = arith.constant 8 : index
    %20 = vector.load %arg6[%c0_23, %c8] : memref<64x36xf32, #tpu.memory_space<vmem>>, vector<64x4xf32>
    tpu.vector_store %arg6[%c0_23, %c8], %19 {strides = array<i32>} : memref<64x36xf32, #tpu.memory_space<vmem>>, vector<64x4xf32>,
    %c1_24 = arith.constant 1 : index
    %c0_25 = arith.constant 0 : index
    %c0_26 = arith.constant 0 : index
    %21 = vector.load %arg5[%c1_24, %c0_25, %c0_26] : memref<10x10x4xf32, #tpu.memory_space<vmem>>, vector<8x8x4xf32>
    %22 = vector.shape_cast %21 : vector<8x8x4xf32> to vector<64x4xf32>
    %c0_27 = arith.constant 0 : index
    %c12 = arith.constant 12 : index
    %23 = vector.load %arg6[%c0_27, %c12] : memref<64x36xf32, #tpu.memory_space<vmem>>, vector<64x4xf32>
    tpu.vector_store %arg6[%c0_27, %c12], %22 {strides = array<i32>} : memref<64x36xf32, #tpu.memory_space<vmem>>, vector<64x4xf32>,
    %c1_28 = arith.constant 1 : index
    %c1_29 = arith.constant 1 : index
    %c0_30 = arith.constant 0 : index
    %24 = vector.load %arg5[%c1_28, %c1_29, %c0_30] : memref<10x10x4xf32, #tpu.memory_space<vmem>>, vector<8x8x4xf32>
    %25 = vector.shape_cast %24 : vector<8x8x4xf32> to vector<64x4xf32>
    %c0_31 = arith.constant 0 : index
    %c16 = arith.constant 16 : index
    %26 = vector.load %arg6[%c0_31, %c16] : memref<64x36xf32, #tpu.memory_space<vmem>>, vector<64x4xf32>
    tpu.vector_store %arg6[%c0_31, %c16], %25 {strides = array<i32>} : memref<64x36xf32, #tpu.memory_space<vmem>>, vector<64x4xf32>,
    %c1_32 = arith.constant 1 : index
    %c2_33 = arith.constant 2 : index
    %c0_34 = arith.constant 0 : index
    %27 = vector.load %arg5[%c1_32, %c2_33, %c0_34] : memref<10x10x4xf32, #tpu.memory_space<vmem>>, vector<8x8x4xf32>
    %28 = vector.shape_cast %27 : vector<8x8x4xf32> to vector<64x4xf32>
    %c0_35 = arith.constant 0 : index
    %c20 = arith.constant 20 : index
    %29 = vector.load %arg6[%c0_35, %c20] : memref<64x36xf32, #tpu.memory_space<vmem>>, vector<64x4xf32>
    tpu.vector_store %arg6[%c0_35, %c20], %28 {strides = array<i32>} : memref<64x36xf32, #tpu.memory_space<vmem>>, vector<64x4xf32>,
    %c2_36 = arith.constant 2 : index
    %c0_37 = arith.constant 0 : index
    %c0_38 = arith.constant 0 : index
    %30 = vector.load %arg5[%c2_36, %c0_37, %c0_38] : memref<10x10x4xf32, #tpu.memory_space<vmem>>, vector<8x8x4xf32>
    %31 = vector.shape_cast %30 : vector<8x8x4xf32> to vector<64x4xf32>
    %c0_39 = arith.constant 0 : index
    %c24 = arith.constant 24 : index
    %32 = vector.load %arg6[%c0_39, %c24] : memref<64x36xf32, #tpu.memory_space<vmem>>, vector<64x4xf32>
    tpu.vector_store %arg6[%c0_39, %c24], %31 {strides = array<i32>} : memref<64x36xf32, #tpu.memory_space<vmem>>, vector<64x4xf32>,
    %c2_40 = arith.constant 2 : index
    %c1_41 = arith.constant 1 : index
    %c0_42 = arith.constant 0 : index
    %33 = vector.load %arg5[%c2_40, %c1_41, %c0_42] : memref<10x10x4xf32, #tpu.memory_space<vmem>>, vector<8x8x4xf32>
    %34 = vector.shape_cast %33 : vector<8x8x4xf32> to vector<64x4xf32>
    %c0_43 = arith.constant 0 : index
    %c28 = arith.constant 28 : index
    %35 = vector.load %arg6[%c0_43, %c28] : memref<64x36xf32, #tpu.memory_space<vmem>>, vector<64x4xf32>
    tpu.vector_store %arg6[%c0_43, %c28], %34 {strides = array<i32>} : memref<64x36xf32, #tpu.memory_space<vmem>>, vector<64x4xf32>,
    %c2_44 = arith.constant 2 : index
    %c2_45 = arith.constant 2 : index
    %c0_46 = arith.constant 0 : index
    %36 = vector.load %arg5[%c2_44, %c2_45, %c0_46] : memref<10x10x4xf32, #tpu.memory_space<vmem>>, vector<8x8x4xf32>
    %37 = vector.shape_cast %36 : vector<8x8x4xf32> to vector<64x4xf32>
    %c0_47 = arith.constant 0 : index
    %c32 = arith.constant 32 : index
    %38 = vector.load %arg6[%c0_47, %c32] : memref<64x36xf32, #tpu.memory_space<vmem>>, vector<64x4xf32>
    tpu.vector_store %arg6[%c0_47, %c32], %37 {strides = array<i32>} : memref<64x36xf32, #tpu.memory_space<vmem>>, vector<64x4xf32>,
    %c0_48 = arith.constant 0 : index
    %c0_49 = arith.constant 0 : index
    %39 = vector.load %arg6[%c0_48, %c0_49] : memref<64x36xf32, #tpu.memory_space<vmem>>, vector<64x36xf32>
    %c0_50 = arith.constant 0 : index
    %c0_51 = arith.constant 0 : index
    %40 = vector.load %arg2[%c0_50, %c0_51] : memref<36x8xf32, #tpu.memory_space<vmem>>, vector<36x8xf32>
    %cst = arith.constant dense<0.000000e+00> : vector<64x8xf32>
    %41 = tpu.matmul %39, %40, %cst {dimension_numbers = #tpu.dot_dimension_numbers<[1], [0], [0], [1], [0, 0, 1, 1], [], []>} : vector<64x36xf32>, vector<36x8xf32>, vector<64x8xf32> -> vector<64x8xf32>
    %cst_52 = arith.constant dense<0.000000e+00> : vector<8xf32>
    %42 = vector.multi_reduction <add>, %41, %cst_52 [0] : vector<64x8xf32> to vector<8xf32>
    %43 = vector.shape_cast %42 : vector<8xf32> to vector<1x8xf32>
    %44 = arith.mulf %41, %41 : vector<64x8xf32>
    %cst_53 = arith.constant dense<0.000000e+00> : vector<8xf32>
    %45 = vector.multi_reduction <add>, %44, %cst_53 [0] : vector<64x8xf32> to vector<8xf32>
    %46 = vector.shape_cast %45 : vector<8xf32> to vector<1x8xf32>
    %47 = tpu.concatenate %43, %46 in 0 : vector<1x8xf32>, vector<1x8xf32> -> vector<2x8xf32>
    %c0_54 = arith.constant 0 : index
    %c0_55 = arith.constant 0 : index
    %c0_56 = arith.constant 0 : index
    %48 = vector.load %arg4[%c0_54, %c0_55, %c0_56] : memref<1x2x8xf32, #tpu.memory_space<vmem>>, vector<1x2x8xf32>
    %49 = vector.shape_cast %48 : vector<1x2x8xf32> to vector<2x8xf32>
    %50 = vector.shape_cast %47 : vector<2x8xf32> to vector<1x2x8xf32>
    tpu.vector_store %arg4[%c0_54, %c0_55, %c0_56], %50 {strides = array<i32>} : memref<1x2x8xf32, #tpu.memory_space<vmem>>, vector<1x2x8xf32>,
    %c0_57 = arith.constant 0 : index
    %c0_58 = arith.constant 0 : index
    %c0_59 = arith.constant 0 : index
    %51 = vector.load %arg3[%c0_57, %c0_58, %c0_59] : memref<1x64x8xf32, #tpu.memory_space<vmem>>, vector<1x64x8xf32>
    %52 = vector.shape_cast %51 : vector<1x64x8xf32> to vector<64x8xf32>
    %53 = vector.shape_cast %41 : vector<64x8xf32> to vector<1x64x8xf32>
    tpu.vector_store %arg3[%c0_57, %c0_58, %c0_59], %53 {strides = array<i32>} : memref<1x64x8xf32, #tpu.memory_space<vmem>>, vector<1x64x8xf32>,
    return
  }
  func.func @transform_0(%arg0: i32) -> (i32, i32, i32, i32, i32) {
    %c0_i32 = arith.constant 0 : i32
    %c0_i32_0 = arith.constant 0 : i32
    %c0_i32_1 = arith.constant 0 : i32
    %c0_i32_2 = arith.constant 0 : i32
    %c0_i32_3 = arith.constant 0 : i32
    return %arg0, %c0_i32, %c0_i32_0, %c0_i32_1, %c0_i32_2 : i32, i32, i32, i32, i32
  }
  func.func @transform_1(%arg0: i32) -> (i32, i32) {
    %c0_i32 = arith.constant 0 : i32
    %c0_i32_0 = arith.constant 0 : i32
    %c0_i32_1 = arith.constant 0 : i32
    return %c0_i32, %c0_i32_0 : i32, i32
  }
  func.func @transform_2(%arg0: i32) -> (i32, i32, i32) {
    %c0_i32 = arith.constant 0 : i32
    %c0_i32_0 = arith.constant 0 : i32
    %c0_i32_1 = arith.constant 0 : i32
    return %arg0, %c0_i32, %c0_i32_0 : i32, i32, i32
  }
  func.func @transform_3(%arg0: i32) -> (i32, i32, i32) {
    %c0_i32 = arith.constant 0 : i32
    %c0_i32_0 = arith.constant 0 : i32
    %c0_i32_1 = arith.constant 0 : i32
    return %arg0, %c0_i32, %c0_i32_0 : i32, i32, i32
  }
}

module attributes {stable_mosaic.version = 11 : i64} {
  func.func @_bn_relu_conv2_kernel(%arg0: i32, %arg1: memref<1x64x8xf32, #tpu.memory_space<vmem>>, %arg2: memref<1x8xf32, #tpu.memory_space<vmem>>, %arg3: memref<1x8xf32, #tpu.memory_space<vmem>>, %arg4: memref<8x72xf32, #tpu.memory_space<vmem>>, %arg5: memref<1x8x64xf32, #tpu.memory_space<vmem>>, %arg6: memref<1x8x2xf32, #tpu.memory_space<vmem>>, %arg7: memref<10x10x8xf32, #tpu.memory_space<vmem>>, %arg8: memref<64x72xf32, #tpu.memory_space<vmem>>) attributes {dimension_semantics = [#tpu.dimension_semantics<arbitrary>], iteration_bounds = array<i64: 2>, scalar_prefetch = 0 : i64, scratch_operands = 2 : i64, tpu.core_type = #tpu.core_type<tc>, window_params = [{transform_indices = @transform_0, window_bounds = array<i64: 1, 64, 8>}, {pipeline_mode = #tpu.pipeline_mode<synchronous>, transform_indices = @transform_1, window_bounds = array<i64: 1, 8>}, {pipeline_mode = #tpu.pipeline_mode<synchronous>, transform_indices = @transform_2, window_bounds = array<i64: 1, 8>}, {pipeline_mode = #tpu.pipeline_mode<synchronous>, transform_indices = @transform_3, window_bounds = array<i64: 8, 72>}, {transform_indices = @transform_4, window_bounds = array<i64: 1, 8, 64>}, {transform_indices = @transform_5, window_bounds = array<i64: 1, 8, 2>}]} {
    %c0_i32 = arith.constant 0 : i32
    %0 = arith.cmpi eq, %arg0, %c0_i32 : i32
    %1 = arith.extui %0 : i1 to i32
    %c0_i32_0 = arith.constant 0 : i32
    %2 = arith.cmpi ne, %1, %c0_i32_0 : i32
    scf.if %2 {
      %cst_58 = arith.constant 0.000000e+00 : f32
      %57 = vector.broadcast %cst_58 : f32 to vector<10x8xf32>
      %c0_59 = arith.constant 0 : index
      %c0_60 = arith.constant 0 : index
      %c0_61 = arith.constant 0 : index
      %58 = vector.load %arg7[%c0_59, %c0_60, %c0_61] : memref<10x10x8xf32, #tpu.memory_space<vmem>>, vector<1x10x8xf32>
      %59 = vector.shape_cast %58 : vector<1x10x8xf32> to vector<10x8xf32>
      %60 = vector.shape_cast %57 : vector<10x8xf32> to vector<1x10x8xf32>
      tpu.vector_store %arg7[%c0_59, %c0_60, %c0_61], %60 {strides = array<i32>} : memref<10x10x8xf32, #tpu.memory_space<vmem>>, vector<1x10x8xf32>,
      %cst_62 = arith.constant 0.000000e+00 : f32
      %61 = vector.broadcast %cst_62 : f32 to vector<10x8xf32>
      %c9 = arith.constant 9 : index
      %c0_63 = arith.constant 0 : index
      %c0_64 = arith.constant 0 : index
      %62 = vector.load %arg7[%c9, %c0_63, %c0_64] : memref<10x10x8xf32, #tpu.memory_space<vmem>>, vector<1x10x8xf32>
      %63 = vector.shape_cast %62 : vector<1x10x8xf32> to vector<10x8xf32>
      %64 = vector.shape_cast %61 : vector<10x8xf32> to vector<1x10x8xf32>
      tpu.vector_store %arg7[%c9, %c0_63, %c0_64], %64 {strides = array<i32>} : memref<10x10x8xf32, #tpu.memory_space<vmem>>, vector<1x10x8xf32>,
      %cst_65 = arith.constant 0.000000e+00 : f32
      %65 = vector.broadcast %cst_65 : f32 to vector<10x1x8xf32>
      %c0_66 = arith.constant 0 : index
      %c0_67 = arith.constant 0 : index
      %c0_68 = arith.constant 0 : index
      %66 = vector.load %arg7[%c0_66, %c0_67, %c0_68] : memref<10x10x8xf32, #tpu.memory_space<vmem>>, vector<10x1x8xf32>
      tpu.vector_store %arg7[%c0_66, %c0_67, %c0_68], %65 {strides = array<i32>} : memref<10x10x8xf32, #tpu.memory_space<vmem>>, vector<10x1x8xf32>,
      %cst_69 = arith.constant 0.000000e+00 : f32
      %67 = vector.broadcast %cst_69 : f32 to vector<10x1x8xf32>
      %c0_70 = arith.constant 0 : index
      %c9_71 = arith.constant 9 : index
      %c0_72 = arith.constant 0 : index
      %68 = vector.load %arg7[%c0_70, %c9_71, %c0_72] : memref<10x10x8xf32, #tpu.memory_space<vmem>>, vector<10x1x8xf32>
      tpu.vector_store %arg7[%c0_70, %c9_71, %c0_72], %67 {strides = array<i32>} : memref<10x10x8xf32, #tpu.memory_space<vmem>>, vector<10x1x8xf32>,
    } else {
    }
    %c0 = arith.constant 0 : index
    %c0_1 = arith.constant 0 : index
    %c0_2 = arith.constant 0 : index
    %3 = vector.load %arg1[%c0, %c0_1, %c0_2] : memref<1x64x8xf32, #tpu.memory_space<vmem>>, vector<1x64x8xf32>
    %4 = vector.shape_cast %3 : vector<1x64x8xf32> to vector<64x8xf32>
    %c0_3 = arith.constant 0 : index
    %c0_4 = arith.constant 0 : index
    %5 = vector.load %arg2[%c0_3, %c0_4] : memref<1x8xf32, #tpu.memory_space<vmem>>, vector<1x8xf32>
    %6 = vector.broadcast %5 : vector<1x8xf32> to vector<64x8xf32>
    %7 = arith.mulf %4, %6 : vector<64x8xf32>
    %c0_5 = arith.constant 0 : index
    %c0_6 = arith.constant 0 : index
    %8 = vector.load %arg3[%c0_5, %c0_6] : memref<1x8xf32, #tpu.memory_space<vmem>>, vector<1x8xf32>
    %9 = vector.broadcast %8 : vector<1x8xf32> to vector<64x8xf32>
    %10 = arith.addf %7, %9 : vector<64x8xf32>
    %cst = arith.constant 0.000000e+00 : f32
    %11 = vector.broadcast %cst : f32 to vector<64x8xf32>
    %12 = arith.maximumf %10, %11 : vector<64x8xf32>
    %13 = vector.shape_cast %12 : vector<64x8xf32> to vector<8x8x8xf32>
    %c1 = arith.constant 1 : index
    %c1_7 = arith.constant 1 : index
    %c0_8 = arith.constant 0 : index
    %14 = vector.load %arg7[%c1, %c1_7, %c0_8] : memref<10x10x8xf32, #tpu.memory_space<vmem>>, vector<8x8x8xf32>
    tpu.vector_store %arg7[%c1, %c1_7, %c0_8], %13 {strides = array<i32>} : memref<10x10x8xf32, #tpu.memory_space<vmem>>, vector<8x8x8xf32>,
    %c0_9 = arith.constant 0 : index
    %c0_10 = arith.constant 0 : index
    %c0_11 = arith.constant 0 : index
    %15 = vector.load %arg7[%c0_9, %c0_10, %c0_11] : memref<10x10x8xf32, #tpu.memory_space<vmem>>, vector<8x8x8xf32>
    %16 = vector.shape_cast %15 : vector<8x8x8xf32> to vector<64x8xf32>
    %c0_12 = arith.constant 0 : index
    %c0_13 = arith.constant 0 : index
    %17 = vector.load %arg8[%c0_12, %c0_13] : memref<64x72xf32, #tpu.memory_space<vmem>>, vector<64x8xf32>
    tpu.vector_store %arg8[%c0_12, %c0_13], %16 {strides = array<i32>} : memref<64x72xf32, #tpu.memory_space<vmem>>, vector<64x8xf32>,
    %c0_14 = arith.constant 0 : index
    %c1_15 = arith.constant 1 : index
    %c0_16 = arith.constant 0 : index
    %18 = vector.load %arg7[%c0_14, %c1_15, %c0_16] : memref<10x10x8xf32, #tpu.memory_space<vmem>>, vector<8x8x8xf32>
    %19 = vector.shape_cast %18 : vector<8x8x8xf32> to vector<64x8xf32>
    %c0_17 = arith.constant 0 : index
    %c8 = arith.constant 8 : index
    %20 = vector.load %arg8[%c0_17, %c8] : memref<64x72xf32, #tpu.memory_space<vmem>>, vector<64x8xf32>
    tpu.vector_store %arg8[%c0_17, %c8], %19 {strides = array<i32>} : memref<64x72xf32, #tpu.memory_space<vmem>>, vector<64x8xf32>,
    %c0_18 = arith.constant 0 : index
    %c2 = arith.constant 2 : index
    %c0_19 = arith.constant 0 : index
    %21 = vector.load %arg7[%c0_18, %c2, %c0_19] : memref<10x10x8xf32, #tpu.memory_space<vmem>>, vector<8x8x8xf32>
    %22 = vector.shape_cast %21 : vector<8x8x8xf32> to vector<64x8xf32>
    %c0_20 = arith.constant 0 : index
    %c16 = arith.constant 16 : index
    %23 = vector.load %arg8[%c0_20, %c16] : memref<64x72xf32, #tpu.memory_space<vmem>>, vector<64x8xf32>
    tpu.vector_store %arg8[%c0_20, %c16], %22 {strides = array<i32>} : memref<64x72xf32, #tpu.memory_space<vmem>>, vector<64x8xf32>,
    %c1_21 = arith.constant 1 : index
    %c0_22 = arith.constant 0 : index
    %c0_23 = arith.constant 0 : index
    %24 = vector.load %arg7[%c1_21, %c0_22, %c0_23] : memref<10x10x8xf32, #tpu.memory_space<vmem>>, vector<8x8x8xf32>
    %25 = vector.shape_cast %24 : vector<8x8x8xf32> to vector<64x8xf32>
    %c0_24 = arith.constant 0 : index
    %c24 = arith.constant 24 : index
    %26 = vector.load %arg8[%c0_24, %c24] : memref<64x72xf32, #tpu.memory_space<vmem>>, vector<64x8xf32>
    tpu.vector_store %arg8[%c0_24, %c24], %25 {strides = array<i32>} : memref<64x72xf32, #tpu.memory_space<vmem>>, vector<64x8xf32>,
    %c1_25 = arith.constant 1 : index
    %c1_26 = arith.constant 1 : index
    %c0_27 = arith.constant 0 : index
    %27 = vector.load %arg7[%c1_25, %c1_26, %c0_27] : memref<10x10x8xf32, #tpu.memory_space<vmem>>, vector<8x8x8xf32>
    %28 = vector.shape_cast %27 : vector<8x8x8xf32> to vector<64x8xf32>
    %c0_28 = arith.constant 0 : index
    %c32 = arith.constant 32 : index
    %29 = vector.load %arg8[%c0_28, %c32] : memref<64x72xf32, #tpu.memory_space<vmem>>, vector<64x8xf32>
    tpu.vector_store %arg8[%c0_28, %c32], %28 {strides = array<i32>} : memref<64x72xf32, #tpu.memory_space<vmem>>, vector<64x8xf32>,
    %c1_29 = arith.constant 1 : index
    %c2_30 = arith.constant 2 : index
    %c0_31 = arith.constant 0 : index
    %30 = vector.load %arg7[%c1_29, %c2_30, %c0_31] : memref<10x10x8xf32, #tpu.memory_space<vmem>>, vector<8x8x8xf32>
    %31 = vector.shape_cast %30 : vector<8x8x8xf32> to vector<64x8xf32>
    %c0_32 = arith.constant 0 : index
    %c40 = arith.constant 40 : index
    %32 = vector.load %arg8[%c0_32, %c40] : memref<64x72xf32, #tpu.memory_space<vmem>>, vector<64x8xf32>
    tpu.vector_store %arg8[%c0_32, %c40], %31 {strides = array<i32>} : memref<64x72xf32, #tpu.memory_space<vmem>>, vector<64x8xf32>,
    %c2_33 = arith.constant 2 : index
    %c0_34 = arith.constant 0 : index
    %c0_35 = arith.constant 0 : index
    %33 = vector.load %arg7[%c2_33, %c0_34, %c0_35] : memref<10x10x8xf32, #tpu.memory_space<vmem>>, vector<8x8x8xf32>
    %34 = vector.shape_cast %33 : vector<8x8x8xf32> to vector<64x8xf32>
    %c0_36 = arith.constant 0 : index
    %c48 = arith.constant 48 : index
    %35 = vector.load %arg8[%c0_36, %c48] : memref<64x72xf32, #tpu.memory_space<vmem>>, vector<64x8xf32>
    tpu.vector_store %arg8[%c0_36, %c48], %34 {strides = array<i32>} : memref<64x72xf32, #tpu.memory_space<vmem>>, vector<64x8xf32>,
    %c2_37 = arith.constant 2 : index
    %c1_38 = arith.constant 1 : index
    %c0_39 = arith.constant 0 : index
    %36 = vector.load %arg7[%c2_37, %c1_38, %c0_39] : memref<10x10x8xf32, #tpu.memory_space<vmem>>, vector<8x8x8xf32>
    %37 = vector.shape_cast %36 : vector<8x8x8xf32> to vector<64x8xf32>
    %c0_40 = arith.constant 0 : index
    %c56 = arith.constant 56 : index
    %38 = vector.load %arg8[%c0_40, %c56] : memref<64x72xf32, #tpu.memory_space<vmem>>, vector<64x8xf32>
    tpu.vector_store %arg8[%c0_40, %c56], %37 {strides = array<i32>} : memref<64x72xf32, #tpu.memory_space<vmem>>, vector<64x8xf32>,
    %c2_41 = arith.constant 2 : index
    %c2_42 = arith.constant 2 : index
    %c0_43 = arith.constant 0 : index
    %39 = vector.load %arg7[%c2_41, %c2_42, %c0_43] : memref<10x10x8xf32, #tpu.memory_space<vmem>>, vector<8x8x8xf32>
    %40 = vector.shape_cast %39 : vector<8x8x8xf32> to vector<64x8xf32>
    %c0_44 = arith.constant 0 : index
    %c64 = arith.constant 64 : index
    %41 = vector.load %arg8[%c0_44, %c64] : memref<64x72xf32, #tpu.memory_space<vmem>>, vector<64x8xf32>
    tpu.vector_store %arg8[%c0_44, %c64], %40 {strides = array<i32>} : memref<64x72xf32, #tpu.memory_space<vmem>>, vector<64x8xf32>,
    %c0_45 = arith.constant 0 : index
    %c0_46 = arith.constant 0 : index
    %42 = vector.load %arg4[%c0_45, %c0_46] : memref<8x72xf32, #tpu.memory_space<vmem>>, vector<8x72xf32>
    %c0_47 = arith.constant 0 : index
    %c0_48 = arith.constant 0 : index
    %43 = vector.load %arg8[%c0_47, %c0_48] : memref<64x72xf32, #tpu.memory_space<vmem>>, vector<64x72xf32>
    %cst_49 = arith.constant dense<0.000000e+00> : vector<8x64xf32>
    %44 = tpu.matmul %42, %43, %cst_49 {dimension_numbers = #tpu.dot_dimension_numbers<[1], [1], [0], [0], [0, 0, 1, 0], [], []>} : vector<8x72xf32>, vector<64x72xf32>, vector<8x64xf32> -> vector<8x64xf32>
    %cst_50 = arith.constant dense<0.000000e+00> : vector<8xf32>
    %45 = vector.multi_reduction <add>, %44, %cst_50 [1] : vector<8x64xf32> to vector<8xf32>
    %46 = vector.shape_cast %45 : vector<8xf32> to vector<8x1xf32>
    %47 = arith.mulf %44, %44 : vector<8x64xf32>
    %cst_51 = arith.constant dense<0.000000e+00> : vector<8xf32>
    %48 = vector.multi_reduction <add>, %47, %cst_51 [1] : vector<8x64xf32> to vector<8xf32>
    %49 = vector.shape_cast %48 : vector<8xf32> to vector<8x1xf32>
    %50 = tpu.concatenate %46, %49 in 1 : vector<8x1xf32>, vector<8x1xf32> -> vector<8x2xf32>
    %c0_52 = arith.constant 0 : index
    %c0_53 = arith.constant 0 : index
    %c0_54 = arith.constant 0 : index
    %51 = vector.load %arg6[%c0_52, %c0_53, %c0_54] : memref<1x8x2xf32, #tpu.memory_space<vmem>>, vector<1x8x2xf32>
    %52 = vector.shape_cast %51 : vector<1x8x2xf32> to vector<8x2xf32>
    %53 = vector.shape_cast %50 : vector<8x2xf32> to vector<1x8x2xf32>
    tpu.vector_store %arg6[%c0_52, %c0_53, %c0_54], %53 {strides = array<i32>} : memref<1x8x2xf32, #tpu.memory_space<vmem>>, vector<1x8x2xf32>,
    %c0_55 = arith.constant 0 : index
    %c0_56 = arith.constant 0 : index
    %c0_57 = arith.constant 0 : index
    %54 = vector.load %arg5[%c0_55, %c0_56, %c0_57] : memref<1x8x64xf32, #tpu.memory_space<vmem>>, vector<1x8x64xf32>
    %55 = vector.shape_cast %54 : vector<1x8x64xf32> to vector<8x64xf32>
    %56 = vector.shape_cast %44 : vector<8x64xf32> to vector<1x8x64xf32>
    tpu.vector_store %arg5[%c0_55, %c0_56, %c0_57], %56 {strides = array<i32>} : memref<1x8x64xf32, #tpu.memory_space<vmem>>, vector<1x8x64xf32>,
    return
  }
  func.func @transform_0(%arg0: i32) -> (i32, i32, i32) {
    %c0_i32 = arith.constant 0 : i32
    %c0_i32_0 = arith.constant 0 : i32
    %c0_i32_1 = arith.constant 0 : i32
    return %arg0, %c0_i32, %c0_i32_0 : i32, i32, i32
  }
  func.func @transform_1(%arg0: i32) -> (i32, i32) {
    %c0_i32 = arith.constant 0 : i32
    %c0_i32_0 = arith.constant 0 : i32
    %c0_i32_1 = arith.constant 0 : i32
    return %c0_i32, %c0_i32_0 : i32, i32
  }
  func.func @transform_2(%arg0: i32) -> (i32, i32) {
    %c0_i32 = arith.constant 0 : i32
    %c0_i32_0 = arith.constant 0 : i32
    %c0_i32_1 = arith.constant 0 : i32
    return %c0_i32, %c0_i32_0 : i32, i32
  }
  func.func @transform_3(%arg0: i32) -> (i32, i32) {
    %c0_i32 = arith.constant 0 : i32
    %c0_i32_0 = arith.constant 0 : i32
    %c0_i32_1 = arith.constant 0 : i32
    return %c0_i32, %c0_i32_0 : i32, i32
  }
  func.func @transform_4(%arg0: i32) -> (i32, i32, i32) {
    %c0_i32 = arith.constant 0 : i32
    %c0_i32_0 = arith.constant 0 : i32
    %c0_i32_1 = arith.constant 0 : i32
    return %arg0, %c0_i32, %c0_i32_0 : i32, i32, i32
  }
  func.func @transform_5(%arg0: i32) -> (i32, i32, i32) {
    %c0_i32 = arith.constant 0 : i32
    %c0_i32_0 = arith.constant 0 : i32
    %c0_i32_1 = arith.constant 0 : i32
    return %arg0, %c0_i32, %c0_i32_0 : i32, i32, i32
  }
}

module attributes {stable_mosaic.version = 11 : i64} {
  func.func @_bn_relu_out_kernel(%arg0: i32, %arg1: memref<1x8x64xf32, #tpu.memory_space<vmem>>, %arg2: memref<8x1xf32, #tpu.memory_space<vmem>>, %arg3: memref<8x1xf32, #tpu.memory_space<vmem>>, %arg4: memref<1x8x64xf32, #tpu.memory_space<vmem>>) attributes {dimension_semantics = [#tpu.dimension_semantics<arbitrary>], iteration_bounds = array<i64: 2>, scalar_prefetch = 0 : i64, scratch_operands = 0 : i64, tpu.core_type = #tpu.core_type<tc>, window_params = [{transform_indices = @transform_0, window_bounds = array<i64: 1, 8, 64>}, {pipeline_mode = #tpu.pipeline_mode<synchronous>, transform_indices = @transform_1, window_bounds = array<i64: 8, 1>}, {pipeline_mode = #tpu.pipeline_mode<synchronous>, transform_indices = @transform_2, window_bounds = array<i64: 8, 1>}, {transform_indices = @transform_3, window_bounds = array<i64: 1, 8, 64>}]} {
    %c0 = arith.constant 0 : index
    %c0_0 = arith.constant 0 : index
    %c0_1 = arith.constant 0 : index
    %0 = vector.load %arg1[%c0, %c0_0, %c0_1] : memref<1x8x64xf32, #tpu.memory_space<vmem>>, vector<1x8x64xf32>
    %1 = vector.shape_cast %0 : vector<1x8x64xf32> to vector<8x64xf32>
    %c0_2 = arith.constant 0 : index
    %c0_3 = arith.constant 0 : index
    %2 = vector.load %arg2[%c0_2, %c0_3] : memref<8x1xf32, #tpu.memory_space<vmem>>, vector<8x1xf32>
    %3 = vector.broadcast %2 : vector<8x1xf32> to vector<8x64xf32>
    %4 = arith.mulf %1, %3 : vector<8x64xf32>
    %c0_4 = arith.constant 0 : index
    %c0_5 = arith.constant 0 : index
    %5 = vector.load %arg3[%c0_4, %c0_5] : memref<8x1xf32, #tpu.memory_space<vmem>>, vector<8x1xf32>
    %6 = vector.broadcast %5 : vector<8x1xf32> to vector<8x64xf32>
    %7 = arith.addf %4, %6 : vector<8x64xf32>
    %cst = arith.constant 0.000000e+00 : f32
    %8 = vector.broadcast %cst : f32 to vector<8x64xf32>
    %9 = arith.maximumf %7, %8 : vector<8x64xf32>
    %c0_6 = arith.constant 0 : index
    %c0_7 = arith.constant 0 : index
    %c0_8 = arith.constant 0 : index
    %10 = vector.load %arg4[%c0_6, %c0_7, %c0_8] : memref<1x8x64xf32, #tpu.memory_space<vmem>>, vector<1x8x64xf32>
    %11 = vector.shape_cast %10 : vector<1x8x64xf32> to vector<8x64xf32>
    %12 = vector.shape_cast %9 : vector<8x64xf32> to vector<1x8x64xf32>
    tpu.vector_store %arg4[%c0_6, %c0_7, %c0_8], %12 {strides = array<i32>} : memref<1x8x64xf32, #tpu.memory_space<vmem>>, vector<1x8x64xf32>,
    return
  }
  func.func @transform_0(%arg0: i32) -> (i32, i32, i32) {
    %c0_i32 = arith.constant 0 : i32
    %c0_i32_0 = arith.constant 0 : i32
    %c0_i32_1 = arith.constant 0 : i32
    return %arg0, %c0_i32, %c0_i32_0 : i32, i32, i32
  }
  func.func @transform_1(%arg0: i32) -> (i32, i32) {
    %c0_i32 = arith.constant 0 : i32
    %c0_i32_0 = arith.constant 0 : i32
    %c0_i32_1 = arith.constant 0 : i32
    return %c0_i32, %c0_i32_0 : i32, i32
  }
  func.func @transform_2(%arg0: i32) -> (i32, i32) {
    %c0_i32 = arith.constant 0 : i32
    %c0_i32_0 = arith.constant 0 : i32
    %c0_i32_1 = arith.constant 0 : i32
    return %c0_i32, %c0_i32_0 : i32, i32
  }
  func.func @transform_3(%arg0: i32) -> (i32, i32, i32) {
    %c0_i32 = arith.constant 0 : i32
    %c0_i32_0 = arith.constant 0 : i32
    %c0_i32_1 = arith.constant 0 : i32
    return %arg0, %c0_i32, %c0_i32_0 : i32, i32, i32
  }
}

</mosaic_0001>

<bundles_post_ra>
// kernel: down_forward.5
= control target key start
LH: loop header
LB: loop body
LE: loop exit
PB: predicated region body
PF: predicated region fallthrough
CT: control target
= control target key end

     0   :  { %s285_s12 = smov 0   ;;  %s302_s0 = inlined_call_operand.vmem [shape: f32[2,8,64], index: 0, kind: input, shape index: {}]   ;;  %s303_s1 = inlined_call_operand.vmem [shape: f32[8,1], index: 1, kind: input, shape index: {}]   ;;  %s304_s2 = inlined_call_operand.vmem [shape: f32[8,1], index: 2, kind: input, shape index: {}]   ;;  %s305_s3 = inlined_call_operand.vmem [shape: f32[2,8,64], index: 3, kind: output, shape index: {}]  }
   0x1 LB: > { %s237_s13 = sadd.s32 4294967295, %s262_s12   ;;  %p241_p0 = scmp.ge.s32.totalorder %s262_s12, 1  ;;  %s262_s12 = sphi %s285_s12, %s13_s12  }
   0x2   : > { %p136_p1 = scmp.lt.s32.totalorder %s262_s12, 3 }
   0x4   : > { %p137_p2 = pnand %p241_p0, %p136_p1 }
   0x5   : > { %p158_p3 = scmp.lt.s32.totalorder (!%p137_p2), %s237_s13, 1 }
   0x6   : > { %140 = sbr.rel (%p137_p2) target bundleno = 146 (0x92), region = 32 }
   0xb   : > { %v167_v0 = vld [vmem:[%s303_s1] sm:$0xff]  ;;  %v264_v1 = vmov 0   ;;  %s307_s13 = smov (!%p158_p3, %s237_s13), 1  ;;  %vm182_vm0 = vcmask 523264  }
   0xc   : > { %255 = vset.pattern.permute.xlu0 %v264_v1  ;;  %v174_v2 = vld [vmem:[%s304_s2] sm:$0xff]  ;;  %s242_s18 = sshll.u32 %s307_s13, 3 }
   0xd   : > { %170 = vperm.xlu0 %255, %v167_v0   ;;  %s161_s21 = scalar_lea.vmem %s302_s0, %s242_s18  ;;  %s165_s24 = scalar_lea.vmem %s305_s3, %s242_s18 }
   0xe   : > { %v166_v4 = vld [vmem:[%s161_s21] sm:$0xff] }
  0x11   : > { %177 = vperm.xlu0 %255, %v174_v2  }
  0x88   : > { %v171_v3 = vpop.permute.xlu0 %170 }
  0x89   : > { %v173_v5 = vmul.f32 %v171_v3, %v166_v4 }
  0x8c   : > { %v178_v6 = vpop.permute.xlu0 %177 }
  0x8d   : > { %v180_v7 = vadd.f32 %v178_v6, %v173_v5 }
  0x8f   : > { %v181_v8 = vmax.f32 %v180_v7, 0.0 }
  0x91   : > { %183 = vst.msk [vmem:[%s165_s24] sm:$0xff] %vm182_vm0, %v181_v8 }
  0x92 PF: > { %s13_s12 = sadd.s32 1, %s262_s12  }
  0x93   : > { %p10_p4 = scmp.ge.s32.totalorder %s13_s12, 4  }
  0x95   :  { %12 = sbr.rel (!%p10_p4) target bundleno = 1 (0x1), region = 62 }

// kernel: down_forward.3
= control target key start
LH: loop header
LB: loop body
LE: loop exit
PB: predicated region body
PF: predicated region fallthrough
CT: control target
= control target key end

     0   :  { %s1127_s12 = smov 0   ;;  %s1409_s0 = inlined_call_operand.vmem [shape: f32[2,8,2,8,8], index: 0, kind: input, shape index: {}]   ;;  %s1410_s1 = inlined_call_operand.vmem [shape: f32[36,8], index: 1, kind: input, shape index: {}]   ;;  %s1411_s2 = inlined_call_operand.vmem [shape: f32[2,64,8], index: 2, kind: output, shape index: {0}]   ;;  %s1412_s3 = inlined_call_operand.vmem [shape: f32[2,2,8], index: 3, kind: output, shape index: {1}]  }
   0x1 LB: > { %s994_s13 = sadd.s32 4294967295, %s1095_s12   ;;  %p998_p0 = scmp.ge.s32.totalorder %s1095_s12, 1  ;;  %s1095_s12 = sphi %s1127_s12, %s14_s12  }
   0x2   : > { %p140_p1 = scmp.lt.s32.totalorder %s1095_s12, 3 }
   0x4   : > { %p141_p2 = pnand %p998_p0, %p140_p1 }
   0x5   : > { %p168_p3 = scmp.lt.s32.totalorder (!%p141_p2), %s994_s13, 1  ;;  %p1004_p4 = scmp.ne.s32.totalorder (!%p141_p2), %s994_s13, 0 }
   0x6   : > { %144 = sbr.rel (%p141_p2) target bundleno = 622 (0x26e), region = 28 }
   0xb   : > { %s169_s14 = scalar_select %p168_p3, %s994_s13, 1 }
   0xc   : > { %185 = sbr.rel (%p1004_p4) target bundleno = 30 (0x1e), region = 32 }
   0xd   : > { %s1024_s15 = sshll.u32 %s169_s14, 7  ;;  %s1025_s16 = sshll.u32 %s169_s14, 6 }
   0xe   : > { %s1138_s19 = scalar_lea.vmem %s1409_s0, %s1024_s15  ;;  %s1143_s22 = scalar_lea.vmem %s1411_s2, %s1025_s16 }
   0xf   : > { %s1003_s23 = sshll.u32 %s169_s14, 1 }
  0x10   : > { %s1148_s26 = scalar_lea.vmem %s1412_s3, %s1003_s23 }
  0x11   : > { %vm186_vm0 = vcmask 31744   ;;  %vm188_vm1 = vcmask 25600   ;;  %vm193_vm2 = vcmask 24576   ;;  %v1097_v0 = vmov 0.0  }
  0x12   : > { %187 = vst.msk [vmem:[#allocation2] sm:$0xff] %vm186_vm0, %v1097_v0  ;;  %191 = vst.msk [vmem:[#allocation2 + $0x90] sm:$0xff] %vm186_vm0, %v1097_v0 }
  0x13   : > { %189 = vst.msk [vmem:[#allocation2 + $0x8] sm:$0x3] %vm188_vm1, %v1097_v0  ;;  %192 = vst.msk [vmem:[#allocation2 + $0x98] sm:$0x3] %vm188_vm1, %v1097_v0 }
  0x14   : > { %195 = vst.msk [vmem:[#allocation2 + $0x10] sm:$0x1] %vm193_vm2, %v1097_v0  ;;  %196 = vst.msk [vmem:[#allocation2 + $0x20] sm:$0x1] %vm193_vm2, %v1097_v0 }
  0x15   : > { %197 = vst.msk [vmem:[#allocation2 + $0x30] sm:$0x1] %vm193_vm2, %v1097_v0  ;;  %198 = vst.msk [vmem:[#allocation2 + $0x40] sm:$0x1] %vm193_vm2, %v1097_v0 }
  0x16   : > { %199 = vst.msk [vmem:[#allocation2 + $0x50] sm:$0x1] %vm193_vm2, %v1097_v0  ;;  %200 = vst.msk [vmem:[#allocation2 + $0x60] sm:$0x1] %vm193_vm2, %v1097_v0 }
  0x17   : > { %201 = vst.msk [vmem:[#allocation2 + $0x70] sm:$0x1] %vm193_vm2, %v1097_v0  ;;  %202 = vst.msk [vmem:[#allocation2 + $0x80] sm:$0x1] %vm193_vm2, %v1097_v0 }
  0x18   : > { %205 = vst.msk [vmem:[#allocation2 + $0x19] sm:$0x1] %vm193_vm2, %v1097_v0  ;;  %206 = vst.msk [vmem:[#allocation2 + $0x29] sm:$0x1] %vm193_vm2, %v1097_v0 }
  0x19   : > { %207 = vst.msk [vmem:[#allocation2 + $0x39] sm:$0x1] %vm193_vm2, %v1097_v0  ;;  %208 = vst.msk [vmem:[#allocation2 + $0x49] sm:$0x1] %vm193_vm2, %v1097_v0 }
  0x1a   : > { %209 = vst.msk [vmem:[#allocation2 + $0x59] sm:$0x1] %vm193_vm2, %v1097_v0  ;;  %210 = vst.msk [vmem:[#allocation2 + $0x69] sm:$0x1] %vm193_vm2, %v1097_v0 }
  0x1b   : > { %211 = vst.msk [vmem:[#allocation2 + $0x79] sm:$0x1] %vm193_vm2, %v1097_v0  ;;  %212 = vst.msk [vmem:[#allocation2 + $0x89] sm:$0x1] %vm193_vm2, %v1097_v0 }
  0x1c   : > { %194 = vst.msk [vmem:[#allocation2] sm:$0x1] %vm193_vm2, %v1097_v0  ;;  %203 = vst.msk [vmem:[#allocation2 + $0x90] sm:$0x1] %vm193_vm2, %v1097_v0 }
  0x1d   : > { %204 = vst.msk [vmem:[#allocation2 + $0x9] sm:$0x1] %vm193_vm2, %v1097_v0  ;;  %213 = vst.msk [vmem:[#allocation2 + $0x99] sm:$0x1] %vm193_vm2, %v1097_v0 }
  0x1e PF: > { %v214_v1 = vld [vmem:[%s1138_s19] sm:$0xff]  ;;  %v1005_v2 = vld [vmem:[%s1138_s19 + $0x8] sm:$0xff]  ;;  %v215_v3 = vld [vmem:[%s1138_s19 + $0x10] sm:$0xff]  ;;  %s1098_s27 = smov 124   ;;  %s1099_s28 = smov 4   ;;  %vm280_vm3 = vcmask 31744  }
  0x1f   : > { %v231_v4 = vmax.f32 %v214_v1, %v1005_v2  ;;  %v1006_v5 = vld [vmem:[%s1138_s19 + $0x18] sm:$0xff]  ;;  %v216_v6 = vld [vmem:[%s1138_s19 + $0x20] sm:$0xff]  ;;  %v1007_v7 = vld [vmem:[%s1138_s19 + $0x28] sm:$0xff]  ;;  %s1100_s29 = smov 8   ;;  %s1101_s30 = smov 12   ;;  %vm345_vm4 = vcmask 64544  }
  0x20   : > { %v233_v8 = vmax.f32 %v216_v6, %v1007_v7  ;;  %v217_v9 = vld [vmem:[%s1138_s19 + $0x30] sm:$0xff]  ;;  %v1008_v10 = vld [vmem:[%s1138_s19 + $0x38] sm:$0xff]  ;;  %v232_v11 = vmax.f32 %v215_v3, %v1006_v5  ;;  %v218_v13 = vld [vmem:[%s1138_s19 + $0x40] sm:$0xff]  ;;  %s1102_s4 = smov 16   ;;  %vm394_vm5 = vcmask 97344   ;;  %s1103_s5 = smov 20  }
  0x21   : > { %247 = vrot.lane.b32.xlu0 %v231_v4, %s1098_s27  ;;  %v234_v12 = vmax.f32 %v217_v9, %v1008_v10  ;;  %v1009_v14 = vld [vmem:[%s1138_s19 + $0x48] sm:$0xff]  ;;  %v219_v15 = vld [vmem:[%s1138_s19 + $0x50] sm:$0xff]  ;;  %v1010_v16 = vld [vmem:[%s1138_s19 + $0x58] sm:$0xff]  ;;  %s1104_s6 = smov 24   ;;  %vm736_vm6 = vcmask 1043456   ;;  %s1105_s9 = smov 28  }
  0x22   : > { %251 = vrot.lane.b32.xlu1 %v233_v8, %s1098_s27  ;;  %v235_v17 = vmax.f32 %v218_v13, %v1009_v14  ;;  %v236_v18 = vmax.f32 %v219_v15, %v1010_v16  ;;  %v220_v19 = vld [vmem:[%s1138_s19 + $0x60] sm:$0xff]  ;;  %v1011_v20 = vld [vmem:[%s1138_s19 + $0x68] sm:$0xff]  ;;  %v221_v21 = vld [vmem:[%s1138_s19 + $0x70] sm:$0xff]  ;;  %s1106_s17 = smov 32   ;;  %vm443_vm7 = vcmask 130144   ;;  %vm492_vm8 = vcmask 162944  }
  0x23   : > { %v1012_v22 = vld [vmem:[%s1138_s19 + $0x78] sm:$0xff]  ;;  %v237_v23 = vmax.f32 %v220_v19, %v1011_v20  ;;  %v305_v25 = vld [vmem:[#allocation2 + $0x1] sm:$0xff]  ;;  %v708_v62 = vld [vmem:[%s1410_s1 + $0x10] sm:$0xff]  ;;  %vm541_vm9 = vcmask 195744   ;;  %vm591_vm10 = vcmask 228544   ;;  %vm640_vm11 = vcmask 261344  }
  0x24   : > { %v238_v24 = vmax.f32 %v221_v21, %v1012_v22  ;;  %v354_v26 = vld [vmem:[#allocation2 + $0x2] sm:$0xff]  ;;  %v709_v61 = vld [vmem:[%s1410_s1 + $0x18] sm:$0xff]  ;;  %vm689_vm12 = vcmask 294144   ;;  %vm711_vm13 = vcmask 293888   ;;  %vm845_vm14 = vcmask 64512  }
  0x25   : > { %249 = vrot.lane.b32.xlu0 %v232_v11, %s1098_s27  ;;  %v289_v27 = vld [vmem:[#allocation2] sm:$0xff]  ;;  %v707_v63 = vld [vmem:[%s1410_s1 + $0x8] sm:$0xff]  ;;  %v607_v14 = vld [vmem:[#allocation2 + $0x91] sm:$0xff]  ;;  %vm896_vm15 = vcmask 1040384   ;;  %vm898_vm0 = vcmask 58368  }
  0x26   : > { %253 = vrot.lane.b32.xlu1 %v234_v12, %s1098_s27  ;;  %297 = vst.msk [vmem:[#allocation3] sm:$0xff] %vm280_vm3, %v289_v27  ;;  %v710_v59 = vld [vmem:[%s1410_s1 + $0x20] sm:$0xf] }
  0x27   : > { %1039 = vmatprep.subr.msk.mxu0 %vm736_vm6, %v710_v59  ;;  %1061 = vmatprep.subr.msk.mxu1 %vm736_vm6, %v710_v59  ;;  %v706_v0 = vld [vmem:[%s1410_s1] sm:$0xff] }
  0x28   : > { %1040 = vmatpush3.msk.msra.mxu0 %vm736_vm6, %v710_v59  ;;  %1066 = vmatpush3.msk.msra.mxu1 %vm736_vm6, %v710_v59 }
  0x29   : > { %255 = vrot.lane.b32.xlu0 %v235_v17, %s1098_s27  ;;  %1041 = vmatprep.subr.mxu0 %v709_v61 }
  0x2a   : > { %257 = vrot.lane.b32.xlu1 %v236_v18, %s1098_s27  ;;  %1062 = vmatprep.subr.mxu1 %v709_v61 }
  0x2b   : > { %1042 = vmatpush3.msra.mxu0 %v709_v61  ;;  %1067 = vmatpush3.msra.mxu1 %v709_v61 }
  0x2c   : > { %1043 = vmatprep.subr.mxu0 %v708_v62  ;;  %1063 = vmatprep.subr.mxu1 %v708_v62 }
  0x2d   : > { %259 = vrot.lane.b32.xlu0 %v237_v23, %s1098_s27  ;;  %1044 = vmatpush3.msra.mxu0 %v708_v62 }
  0x2e   : > { %261 = vrot.lane.b32.xlu1 %v238_v24, %s1098_s27  ;;  %1068 = vmatpush3.msra.mxu1 %v708_v62 }
  0x2f   : > { %1045 = vmatprep.subr.mxu0 %v707_v63  ;;  %1064 = vmatprep.subr.mxu1 %v707_v63 }
  0x30   : > { %1046 = vmatpush3.msra.mxu0 %v707_v63  ;;  %1069 = vmatpush3.msra.mxu1 %v707_v63 }
  0x31   : > { %321 = vrot.lane.b32.xlu0 %v305_v25, %s1099_s28  ;;  %1047 = vmatprep.subr.mxu0 %v706_v0 }
  0x32   : > { %1065 = vmatprep.subr.mxu1 %v706_v0  ;;  %1048 = vmatpush3.msra.mxu0 %v706_v0 }
  0x33   : > { %1070 = vmatpush3.msra.mxu1 %v706_v0 }
  0x35   : > { %370 = vrot.lane.b32.xlu0 %v354_v26, %s1100_s29 }
  0x93   : > { %v248_v28 = vpop.permute.xlu0 %247 }
  0x94   : > { %v271_v29 = vmax.f32 %v231_v4, %v248_v28  ;;  %v252_v30 = vpop.permute.xlu1 %251 }
  0x95   : > { %v273_v31 = vmax.f32 %v233_v8, %v252_v30 }
  0x96   : > { %281 = vst.msk [vmem:[#allocation2 + $0x11] sm:$0xff] %vm280_vm3, %v271_v29 }
  0x97   : > { %v250_v32 = vpop.permute.xlu0 %249  ;;  %283 = vst.msk [vmem:[#allocation2 + $0x31] sm:$0xff] %vm280_vm3, %v273_v31 }
  0x98   : > { %v272_v33 = vmax.f32 %v232_v11, %v250_v32  ;;  %v254_v34 = vpop.permute.xlu1 %253  ;;  %v558_v11 = vld [vmem:[#allocation2 + $0x90] sm:$0xff] }
  0x99   : > { %v274_v35 = vmax.f32 %v234_v12, %v254_v34 }
  0x9a   : > { %282 = vst.msk [vmem:[#allocation2 + $0x21] sm:$0xff] %vm280_vm3, %v272_v33 }
  0x9b   : > { %284 = vst.msk [vmem:[#allocation2 + $0x41] sm:$0xff] %vm280_vm3, %v274_v35  ;;  %v256_v36 = vpop.permute.xlu0 %255 }
  0x9c   : > { %v275_v37 = vmax.f32 %v235_v17, %v256_v36  ;;  %v258_v38 = vpop.permute.xlu1 %257  ;;  %v656_v17 = vld [vmem:[#allocation2 + $0x92] sm:$0xff] }
  0x9d   : > { %v403_v39 = vld [vmem:[#allocation2 + $0x10] sm:$0xff]  ;;  %v276_v41 = vmax.f32 %v236_v18, %v258_v38 }
  0x9e   : > { %v306_v40 = vld [vmem:[#allocation2 + $0x11] sm:$0xff]  ;;  %419 = vrot.lane.b32.xlu0 %v403_v39, %s1101_s30  ;;  %285 = vst.msk [vmem:[#allocation2 + $0x51] sm:$0xff] %vm280_vm3, %v275_v37  ;;  %298 = vst.msk [vmem:[#allocation3 + $0x8] sm:$0xff] %vm280_vm3, %v403_v39 }
  0x9f   : > { %323 = vrot.lane.b32.xlu1 %v306_v40, %s1099_s28  ;;  %v552_v42 = vld [vmem:[#allocation2 + $0x30] sm:$0xff]  ;;  %286 = vst.msk [vmem:[#allocation2 + $0x61] sm:$0xff] %vm280_vm3, %v276_v41  ;;  %v260_v43 = vpop.permute.xlu0 %259 }
  0xa0   : > { %300 = vst.msk [vmem:[#allocation3 + $0x18] sm:$0xff] %vm280_vm3, %v552_v42  ;;  %v277_v44 = vmax.f32 %v237_v23, %v260_v43  ;;  %v262_v45 = vpop.permute.xlu1 %261  ;;  %v355_v46 = vld [vmem:[#allocation2 + $0x12] sm:$0xff] }
  0xa1   : > { %v404_v47 = vld [vmem:[#allocation2 + $0x20] sm:$0xff]  ;;  %v278_v48 = vmax.f32 %v238_v24, %v262_v45  ;;  %v308_v54 = vld [vmem:[#allocation2 + $0x31] sm:$0xff] }
  0xa2   : > { %468 = vrot.lane.b32.xlu0 %v306_v40, %s1102_s4  ;;  %v1201_v49 = vld [vmem:[#allocation2 + $0x40] sm:$0xff]  ;;  %287 = vst.msk [vmem:[#allocation2 + $0x71] sm:$0xff] %vm280_vm3, %v277_v44  ;;  %299 = vst.msk [vmem:[#allocation3 + $0x10] sm:$0xff] %vm280_vm3, %v404_v47  ;;  %v357_v58 = vld [vmem:[#allocation2 + $0x32] sm:$0xff] }
  0xa3   : > { %372 = vrot.lane.b32.xlu1 %v355_v46, %s1100_s29  ;;  %v453_v50 = vld [vmem:[#allocation2 + $0x21] sm:$0xff]  ;;  %288 = vst.msk [vmem:[#allocation2 + $0x81] sm:$0xff] %vm280_vm3, %v278_v48  ;;  %v322_v51 = vpop.permute.xlu0 %321  ;;  %301 = vst.msk [vmem:[#allocation3 + $0x20] sm:$0xff] %vm280_vm3, %v1201_v49 }
  0xa4   : > { %346 = vst.msk [vmem:[#allocation3] sm:$0xff] %vm345_vm4, %v322_v51  ;;  %v502_v57 = vld [vmem:[#allocation2 + $0x22] sm:$0xff] }
  0xa5   : > { %v1209_v52 = vld [vmem:[#allocation2 + $0x50] sm:$0xff]  ;;  %v309_v60 = vld [vmem:[#allocation2 + $0x41] sm:$0xff] }
  0xa6   : > { %470 = vrot.lane.b32.xlu0 %v453_v50, %s1102_s4  ;;  %v1213_v53 = vld [vmem:[#allocation2 + $0x60] sm:$0xff]  ;;  %302 = vst.msk [vmem:[#allocation3 + $0x28] sm:$0xff] %vm280_vm3, %v1209_v52  ;;  %v310_v1 = vld [vmem:[#allocation2 + $0x51] sm:$0xff] }
  0xa7   : > { %421 = vrot.lane.b32.xlu1 %v404_v47, %s1101_s30  ;;  %v371_v55 = vpop.permute.xlu0 %370  ;;  %303 = vst.msk [vmem:[#allocation3 + $0x30] sm:$0xff] %vm280_vm3, %v1213_v53  ;;  %v504_v2 = vld [vmem:[#allocation2 + $0x42] sm:$0xff]  ;;  %v359_v3 = vld [vmem:[#allocation2 + $0x52] sm:$0xff] }
  0xa8   : > { %395 = vst.msk [vmem:[#allocation3] sm:$0xff] %vm394_vm5, %v371_v55  ;;  %v311_v4 = vld [vmem:[#allocation2 + $0x61] sm:$0xff] }
  0xa9   : > { %v1220_v56 = vld [vmem:[#allocation2 + $0x70] sm:$0xff]  ;;  %v506_v6 = vld [vmem:[#allocation2 + $0x62] sm:$0xff] }
  0xaa   : > { %327 = vrot.lane.b32.xlu0 %v308_v54, %s1099_s28  ;;  %304 = vst.msk [vmem:[#allocation3 + $0x38] sm:$0xff] %vm280_vm3, %v1220_v56  ;;  %v312_v5 = vld [vmem:[#allocation2 + $0x71] sm:$0xff]  ;;  %v410_v8 = vld [vmem:[#allocation2 + $0x80] sm:$0xff] }
  0xab   : > { %325 = vrot.lane.b32.xlu1 %v453_v50, %s1099_s28  ;;  %v361_v7 = vld [vmem:[#allocation2 + $0x72] sm:$0xff]  ;;  %v459_v9 = vld [vmem:[#allocation2 + $0x81] sm:$0xff] }
  0xac   : > { %v508_v10 = vld [vmem:[#allocation2 + $0x82] sm:$0xff] }
  0xae   : > { %519 = vrot.lane.b32.xlu0 %v502_v57, %s1103_s5 }
  0xaf   : > { %517 = vrot.lane.b32.xlu1 %v355_v46, %s1103_s5 }
  0xb2   : > { %376 = vrot.lane.b32.xlu0 %v357_v58, %s1100_s29 }
  0xb3   : > { %374 = vrot.lane.b32.xlu1 %v502_v57, %s1100_s29 }
  0xb6   : > { %569 = vrot.lane.b32.xlu0 %v552_v42, %s1104_s6 }
  0xb7   : > { %567 = vrot.lane.b32.xlu1 %v404_v47, %s1104_s6 }
  0xba   : > { %425 = vrot.lane.b32.xlu0 %v1201_v49, %s1101_s30 }
  0xbb   : > { %423 = vrot.lane.b32.xlu1 %v552_v42, %s1101_s30 }
  0xbe   : > { %618 = vrot.lane.b32.xlu0 %v308_v54, %s1105_s9 }
  0xbf   : > { %616 = vrot.lane.b32.xlu1 %v453_v50, %s1105_s9 }
  0xc2   : > { %329 = vrot.lane.b32.xlu0 %v309_v60, %s1099_s28 }
  0xc3   : > { %472 = vrot.lane.b32.xlu1 %v308_v54, %s1102_s4 }
  0xc6   : > { %521 = vrot.lane.b32.xlu0 %v357_v58, %s1103_s5 }
  0xc7   : > { %665 = vrot.lane.b32.xlu1 %v502_v57, %s1106_s17 }
  0xca   : > { %331 = vrot.lane.b32.xlu0 %v310_v1, %s1099_s28 }
  0xcb   : > { %474 = vrot.lane.b32.xlu1 %v309_v60, %s1102_s4 }
  0xce   : > { %523 = vrot.lane.b32.xlu0 %v504_v2, %s1103_s5 }
  0xcf   : > { %667 = vrot.lane.b32.xlu1 %v357_v58, %s1106_s17 }
  0xd2   : > { %380 = vrot.lane.b32.xlu0 %v359_v3, %s1100_s29 }
  0xd3   : > { %378 = vrot.lane.b32.xlu1 %v504_v2, %s1100_s29 }
  0xd6   : > { %573 = vrot.lane.b32.xlu0 %v1209_v52, %s1104_s6 }
  0xd7   : > { %571 = vrot.lane.b32.xlu1 %v1201_v49, %s1104_s6 }
  0xda   : > { %429 = vrot.lane.b32.xlu0 %v1213_v53, %s1101_s30 }
  0xdb   : > { %427 = vrot.lane.b32.xlu1 %v1209_v52, %s1101_s30 }
  0xde   : > { %622 = vrot.lane.b32.xlu0 %v310_v1, %s1105_s9 }
  0xdf   : > { %620 = vrot.lane.b32.xlu1 %v309_v60, %s1105_s9 }
  0xe2   : > { %333 = vrot.lane.b32.xlu0 %v311_v4, %s1099_s28 }
  0xe3   : > { %476 = vrot.lane.b32.xlu1 %v310_v1, %s1102_s4 }
  0xe6   : > { %525 = vrot.lane.b32.xlu0 %v359_v3, %s1103_s5 }
  0xe7   : > { %669 = vrot.lane.b32.xlu1 %v504_v2, %s1106_s17 }
  0xea   : > { %335 = vrot.lane.b32.xlu0 %v312_v5, %s1099_s28 }
  0xeb   : > { %478 = vrot.lane.b32.xlu1 %v311_v4, %s1102_s4 }
  0xee   : > { %527 = vrot.lane.b32.xlu0 %v506_v6, %s1103_s5 }
  0xef   : > { %671 = vrot.lane.b32.xlu1 %v359_v3, %s1106_s17 }
  0xf2   : > { %384 = vrot.lane.b32.xlu0 %v361_v7, %s1100_s29 }
  0xf3   : > { %382 = vrot.lane.b32.xlu1 %v506_v6, %s1100_s29 }
  0xf6   : > { %577 = vrot.lane.b32.xlu0 %v1220_v56, %s1104_s6 }
  0xf7   : > { %575 = vrot.lane.b32.xlu1 %v1213_v53, %s1104_s6 }
  0xfa   : > { %433 = vrot.lane.b32.xlu0 %v410_v8, %s1101_s30 }
  0xfb   : > { %431 = vrot.lane.b32.xlu1 %v1220_v56, %s1101_s30 }
  0xfe   : > { %626 = vrot.lane.b32.xlu0 %v312_v5, %s1105_s9 }
  0xff   : > { %624 = vrot.lane.b32.xlu1 %v311_v4, %s1105_s9 }
 0x102   : > { %482 = vrot.lane.b32.xlu0 %v459_v9, %s1102_s4 }
 0x103   : > { %480 = vrot.lane.b32.xlu1 %v312_v5, %s1102_s4 }
 0x106   : > { %675 = vrot.lane.b32.xlu0 %v361_v7, %s1106_s17 }
 0x107   : > { %673 = vrot.lane.b32.xlu1 %v506_v6, %s1106_s17 }
 0x10a   : > { %579 = vrot.lane.b32.xlu0 %v410_v8, %s1104_s6 }
 0x10b   : > { %529 = vrot.lane.b32.xlu1 %v361_v7, %s1103_s5 }
 0x10e   : > { %628 = vrot.lane.b32.xlu0 %v459_v9, %s1105_s9 }
 0x10f   : > { %531 = vrot.lane.b32.xlu1 %v508_v10, %s1103_s5 }
 0x110   : > { %v420_v13 = vpop.permute.xlu0 %419 }
 0x111   : > { %v324_v12 = vpop.permute.xlu1 %323  ;;  %444 = vst.msk [vmem:[#allocation3] sm:$0xff] %vm443_vm7, %v420_v13 }
 0x112   : > { %347 = vst.msk [vmem:[#allocation3 + $0x8] sm:$0xff] %vm345_vm4, %v324_v12  ;;  %677 = vrot.lane.b32.xlu0 %v508_v10, %s1106_s17 }
 0x113   : > { %581 = vrot.lane.b32.xlu1 %v558_v11, %s1104_s6 }
 0x114   : > { %v469_v16 = vpop.permute.xlu0 %468 }
 0x115   : > { %v373_v15 = vpop.permute.xlu1 %372  ;;  %493 = vst.msk [vmem:[#allocation3] sm:$0xff] %vm492_vm8, %v469_v16 }
 0x116   : > { %396 = vst.msk [vmem:[#allocation3 + $0x8] sm:$0xff] %vm394_vm5, %v373_v15 }
 0x117   : > { %630 = vrot.lane.b32.xlu1 %v607_v14, %s1105_s9 }
 0x118   : > { %v471_v19 = vpop.permute.xlu0 %470 }
 0x119   : > { %v422_v18 = vpop.permute.xlu1 %421 }
 0x11a   : > { %445 = vst.msk [vmem:[#allocation3 + $0x8] sm:$0xff] %vm443_vm7, %v422_v18 }
 0x11b   : > { %494 = vst.msk [vmem:[#allocation3 + $0x8] sm:$0xff] %vm492_vm8, %v471_v19  ;;  %679 = vrot.lane.b32.xlu1 %v656_v17, %s1106_s17 }
 0x11c   : > { %v328_v21 = vpop.permute.xlu0 %327 }
 0x11d   : > { %v326_v20 = vpop.permute.xlu1 %325  ;;  %349 = vst.msk [vmem:[#allocation3 + $0x18] sm:$0xff] %vm345_vm4, %v328_v21 }
 0x11e   : > { %348 = vst.msk [vmem:[#allocation3 + $0x10] sm:$0xff] %vm345_vm4, %v326_v20 }
 0x120   : > { %v520_v23 = vpop.permute.xlu0 %519 }
 0x121   : > { %v518_v22 = vpop.permute.xlu1 %517  ;;  %543 = vst.msk [vmem:[#allocation3 + $0x8] sm:$0xff] %vm541_vm9, %v520_v23 }
 0x122   : > { %542 = vst.msk [vmem:[#allocation3] sm:$0xff] %vm541_vm9, %v518_v22 }
 0x124   : > { %v377_v25 = vpop.permute.xlu0 %376 }
 0x125   : > { %v375_v24 = vpop.permute.xlu1 %374  ;;  %398 = vst.msk [vmem:[#allocation3 + $0x18] sm:$0xff] %vm394_vm5, %v377_v25 }
 0x126   : > { %397 = vst.msk [vmem:[#allocation3 + $0x10] sm:$0xff] %vm394_vm5, %v375_v24 }
 0x128   : > { %v570_v27 = vpop.permute.xlu0 %569 }
 0x129   : > { %v568_v26 = vpop.permute.xlu1 %567  ;;  %593 = vst.msk [vmem:[#allocation3 + $0x8] sm:$0xff] %vm591_vm10, %v570_v27 }
 0x12a   : > { %592 = vst.msk [vmem:[#allocation3] sm:$0xff] %vm591_vm10, %v568_v26 }
 0x12c   : > { %v426_v29 = vpop.permute.xlu0 %425 }
 0x12d   : > { %v424_v28 = vpop.permute.xlu1 %423  ;;  %447 = vst.msk [vmem:[#allocation3 + $0x18] sm:$0xff] %vm443_vm7, %v426_v29 }
 0x12e   : > { %446 = vst.msk [vmem:[#allocation3 + $0x10] sm:$0xff] %vm443_vm7, %v424_v28 }
 0x130   : > { %v619_v31 = vpop.permute.xlu0 %618 }
 0x131   : > { %v617_v30 = vpop.permute.xlu1 %616  ;;  %642 = vst.msk [vmem:[#allocation3 + $0x8] sm:$0xff] %vm640_vm11, %v619_v31 }
 0x132   : > { %641 = vst.msk [vmem:[#allocation3] sm:$0xff] %vm640_vm11, %v617_v30 }
 0x134   : > { %v330_v33 = vpop.permute.xlu0 %329 }
 0x135   : > { %v473_v32 = vpop.permute.xlu1 %472  ;;  %350 = vst.msk [vmem:[#allocation3 + $0x20] sm:$0xff] %vm345_vm4, %v330_v33 }
 0x136   : > { %495 = vst.msk [vmem:[#allocation3 + $0x10] sm:$0xff] %vm492_vm8, %v473_v32 }
 0x138   : > { %v522_v35 = vpop.permute.xlu0 %521 }
 0x139   : > { %v666_v34 = vpop.permute.xlu1 %665  ;;  %544 = vst.msk [vmem:[#allocation3 + $0x10] sm:$0xff] %vm541_vm9, %v522_v35 }
 0x13a   : > { %690 = vst.msk [vmem:[#allocation3] sm:$0xff] %vm689_vm12, %v666_v34 }
 0x13c   : > { %v332_v37 = vpop.permute.xlu0 %331 }
 0x13d   : > { %v475_v36 = vpop.permute.xlu1 %474  ;;  %351 = vst.msk [vmem:[#allocation3 + $0x28] sm:$0xff] %vm345_vm4, %v332_v37 }
 0x13e   : > { %496 = vst.msk [vmem:[#allocation3 + $0x18] sm:$0xff] %vm492_vm8, %v475_v36 }
 0x140   : > { %v524_v39 = vpop.permute.xlu0 %523 }
 0x141   : > { %v668_v38 = vpop.permute.xlu1 %667  ;;  %v698_v40 = vld [vmem:[#allocation3] sm:$0xff]  ;;  %545 = vst.msk [vmem:[#allocation3 + $0x18] sm:$0xff] %vm541_vm9, %v524_v39 }
 0x142   : > { %691 = vst.msk [vmem:[#allocation3 + $0x8] sm:$0xff] %vm689_vm12, %v668_v38  ;;  %1049 = vmatprep.mubr.msk.f32.mxu0 %vm711_vm13, %v698_v40 }
 0x144   : > { %v381_v42 = vpop.permute.xlu0 %380 }
 0x145   : > { %v379_v41 = vpop.permute.xlu1 %378  ;;  %400 = vst.msk [vmem:[#allocation3 + $0x28] sm:$0xff] %vm394_vm5, %v381_v42 }
 0x146   : > { %399 = vst.msk [vmem:[#allocation3 + $0x20] sm:$0xff] %vm394_vm5, %v379_v41 }
 0x148   : > { %v574_v44 = vpop.permute.xlu0 %573 }
 0x149   : > { %v572_v43 = vpop.permute.xlu1 %571  ;;  %v699_v45 = vld [vmem:[#allocation3 + $0x8] sm:$0xff]  ;;  %595 = vst.msk [vmem:[#allocation3 + $0x18] sm:$0xff] %vm591_vm10, %v574_v44 }
 0x14a   : > { %594 = vst.msk [vmem:[#allocation3 + $0x10] sm:$0xff] %vm591_vm10, %v572_v43  ;;  %1050 = vmatmul.mubr.msk.f32.vlgmr.msra.gmra.mxu0 %vm711_vm13, %v699_v45 }
 0x14c   : > { %v430_v47 = vpop.permute.xlu0 %429 }
 0x14d   : > { %v428_v46 = vpop.permute.xlu1 %427  ;;  %449 = vst.msk [vmem:[#allocation3 + $0x28] sm:$0xff] %vm443_vm7, %v430_v47 }
 0x14e   : > { %448 = vst.msk [vmem:[#allocation3 + $0x20] sm:$0xff] %vm443_vm7, %v428_v46 }
 0x150   : > { %v623_v49 = vpop.permute.xlu0 %622 }
 0x151   : > { %v621_v48 = vpop.permute.xlu1 %620  ;;  %644 = vst.msk [vmem:[#allocation3 + $0x18] sm:$0xff] %vm640_vm11, %v623_v49 }
 0x152   : > { %643 = vst.msk [vmem:[#allocation3 + $0x10] sm:$0xff] %vm640_vm11, %v621_v48 }
 0x154   : > { %v334_v51 = vpop.permute.xlu0 %333 }
 0x155   : > { %v477_v50 = vpop.permute.xlu1 %476  ;;  %352 = vst.msk [vmem:[#allocation3 + $0x30] sm:$0xff] %vm345_vm4, %v334_v51 }
 0x156   : > { %497 = vst.msk [vmem:[#allocation3 + $0x20] sm:$0xff] %vm492_vm8, %v477_v50 }
 0x158   : > { %v526_v53 = vpop.permute.xlu0 %525 }
 0x159   : > { %v670_v52 = vpop.permute.xlu1 %669  ;;  %546 = vst.msk [vmem:[#allocation3 + $0x20] sm:$0xff] %vm541_vm9, %v526_v53 }
 0x15a   : > { %692 = vst.msk [vmem:[#allocation3 + $0x10] sm:$0xff] %vm689_vm12, %v670_v52 }
 0x15c   : > { %v336_v55 = vpop.permute.xlu0 %335 }
 0x15d   : > { %v479_v54 = vpop.permute.xlu1 %478  ;;  %353 = vst.msk [vmem:[#allocation3 + $0x38] sm:$0xff] %vm345_vm4, %v336_v55 }
 0x15e   : > { %498 = vst.msk [vmem:[#allocation3 + $0x28] sm:$0xff] %vm492_vm8, %v479_v54 }
 0x160   : > { %v528_v57 = vpop.permute.xlu0 %527 }
 0x161   : > { %v672_v56 = vpop.permute.xlu1 %671  ;;  %v700_v58 = vld [vmem:[#allocation3 + $0x10] sm:$0xff]  ;;  %547 = vst.msk [vmem:[#allocation3 + $0x28] sm:$0xff] %vm541_vm9, %v528_v57 }
 0x162   : > { %693 = vst.msk [vmem:[#allocation3 + $0x18] sm:$0xff] %vm689_vm12, %v672_v56  ;;  %1052 = vmatprep.mubr.msk.f32.mxu0 %vm711_vm13, %v700_v58 }
 0x164   : > { %v385_v60 = vpop.permute.xlu0 %384 }
 0x165   : > { %v383_v59 = vpop.permute.xlu1 %382  ;;  %402 = vst.msk [vmem:[#allocation3 + $0x38] sm:$0xff] %vm394_vm5, %v385_v60 }
 0x166   : > { %401 = vst.msk [vmem:[#allocation3 + $0x30] sm:$0xff] %vm394_vm5, %v383_v59 }
 0x168   : > { %v578_v62 = vpop.permute.xlu0 %577 }
 0x169   : > { %v576_v61 = vpop.permute.xlu1 %575  ;;  %v701_v63 = vld [vmem:[#allocation3 + $0x18] sm:$0xff]  ;;  %597 = vst.msk [vmem:[#allocation3 + $0x28] sm:$0xff] %vm591_vm10, %v578_v62 }
 0x16a   : > { %596 = vst.msk [vmem:[#allocation3 + $0x20] sm:$0xff] %vm591_vm10, %v576_v61  ;;  %1053 = vmatmul.mubr.msk.f32.gmra.mxu0 %vm711_vm13, %v701_v63 }
 0x16c   : > { %v434_v1 = vpop.permute.xlu0 %433 }
 0x16d   : > { %v432_v0 = vpop.permute.xlu1 %431  ;;  %451 = vst.msk [vmem:[#allocation3 + $0x38] sm:$0xff] %vm443_vm7, %v434_v1 }
 0x16e   : > { %450 = vst.msk [vmem:[#allocation3 + $0x30] sm:$0xff] %vm443_vm7, %v432_v0 }
 0x170   : > { %v627_v3 = vpop.permute.xlu0 %626 }
 0x171   : > { %v625_v2 = vpop.permute.xlu1 %624  ;;  %646 = vst.msk [vmem:[#allocation3 + $0x28] sm:$0xff] %vm640_vm11, %v627_v3 }
 0x172   : > { %645 = vst.msk [vmem:[#allocation3 + $0x20] sm:$0xff] %vm640_vm11, %v625_v2 }
 0x174   : > { %v483_v5 = vpop.permute.xlu0 %482 }
 0x175   : > { %v481_v4 = vpop.permute.xlu1 %480  ;;  %500 = vst.msk [vmem:[#allocation3 + $0x38] sm:$0xff] %vm492_vm8, %v483_v5 }
 0x176   : > { %499 = vst.msk [vmem:[#allocation3 + $0x30] sm:$0xff] %vm492_vm8, %v481_v4 }
 0x178   : > { %v676_v7 = vpop.permute.xlu0 %675 }
 0x179   : > { %v674_v6 = vpop.permute.xlu1 %673  ;;  %695 = vst.msk [vmem:[#allocation3 + $0x28] sm:$0xff] %vm689_vm12, %v676_v7 }
 0x17a   : > { %694 = vst.msk [vmem:[#allocation3 + $0x20] sm:$0xff] %vm689_vm12, %v674_v6 }
 0x17c   : > { %v580_v9 = vpop.permute.xlu0 %579 }
 0x17d   : > { %v530_v8 = vpop.permute.xlu1 %529 }
 0x17e   : > { %548 = vst.msk [vmem:[#allocation3 + $0x30] sm:$0xff] %vm541_vm9, %v530_v8 }
 0x17f   : > { %598 = vst.msk [vmem:[#allocation3 + $0x30] sm:$0xff] %vm591_vm10, %v580_v9 }
 0x180   : > { %v629_v11 = vpop.permute.xlu0 %628  ;;  %v703_v13 = vld [vmem:[#allocation3 + $0x28] sm:$0xff] }
 0x181   : > { %v532_v10 = vpop.permute.xlu1 %531  ;;  %v702_v12 = vld [vmem:[#allocation3 + $0x20] sm:$0xff]  ;;  %647 = vst.msk [vmem:[#allocation3 + $0x30] sm:$0xff] %vm640_vm11, %v629_v11 }
 0x182   : > { %549 = vst.msk [vmem:[#allocation3 + $0x38] sm:$0xff] %vm541_vm9, %v532_v10  ;;  %1055 = vmatprep.mubr.msk.f32.mxu1 %vm711_vm13, %v702_v12 }
 0x183   : > { %1056 = vmatmul.mubr.msk.f32.vlgmr.msra.gmra.mxu1 %vm711_vm13, %v703_v13 }
 0x184   : > { %v678_v15 = vpop.permute.xlu0 %677 }
 0x185   : > { %v582_v14 = vpop.permute.xlu1 %581  ;;  %696 = vst.msk [vmem:[#allocation3 + $0x30] sm:$0xff] %vm689_vm12, %v678_v15 }
 0x186   : > { %599 = vst.msk [vmem:[#allocation3 + $0x38] sm:$0xff] %vm591_vm10, %v582_v14 }
 0x189   : > { %v631_v16 = vpop.permute.xlu1 %630 }
 0x18a   : > { %648 = vst.msk [vmem:[#allocation3 + $0x38] sm:$0xff] %vm640_vm11, %v631_v16 }
 0x18c   : > { %v704_v18 = vld [vmem:[#allocation3 + $0x30] sm:$0xff] }
 0x18d   : > { %v680_v17 = vpop.permute.xlu1 %679  ;;  %1058 = vmatprep.mubr.msk.f32.mxu1 %vm711_vm13, %v704_v18 }
 0x18e   : > { %697 = vst.msk [vmem:[#allocation3 + $0x38] sm:$0xff] %vm689_vm12, %v680_v17 }
 0x195   : > { %v705_v19 = vld [vmem:[#allocation3 + $0x38] sm:$0xff] }
 0x196   : > { %1059 = vmatmul.mubr.msk.f32.gmra.mxu1 %vm711_vm13, %v705_v19 }
 0x20a   : > { %v1051_v20 = vpop.f32.mrf.mxu0 }
 0x20b   : > { %v868_v21 = vmul.f32 %v1051_v20, %v1051_v20  ;;  %901 = vst.msk [vmem:[%s1143_s22 + $0x8] sm:$0xff] %vm845_vm14, %v1051_v20  ;;  %v847_v23 = vsel %vm845_vm14, %v1051_v20, 0.0 }
 0x20c   : > { %v806_v22 = vpop.f32.mrf.mxu0 }
 0x20d   : > { %v846_v24 = vsel %vm845_vm14, %v806_v22, 0.0  ;;  %v867_v25 = vmul.f32 %v806_v22, %v806_v22  ;;  %900 = vst.msk [vmem:[%s1143_s22] sm:$0xff] %vm845_vm14, %v806_v22  ;;  %v876_v27 = vsel %vm845_vm14, %v868_v21, 0.0 }
 0x20e   : > { %v848_v26 = vadd.f32 %v847_v23, %v846_v24 }
 0x20f   : > { %v875_v28 = vsel %vm845_vm14, %v867_v25, 0.0 }
 0x210   : > { %v877_v29 = vadd.f32 %v876_v27, %v875_v28 }
 0x22a   : > { %v1054_v30 = vpop.f32.mrf.mxu0 }
 0x22b   : > { %903 = vst.msk [vmem:[%s1143_s22 + $0x18] sm:$0xff] %vm845_vm14, %v1054_v30  ;;  %v870_v38 = vmul.f32 %v1054_v30, %v1054_v30  ;;  %v851_v41 = vsel %vm845_vm14, %v1054_v30, 0.0 }
 0x22c   : > { %v816_v31 = vpop.f32.mrf.mxu0 }
 0x22d   : > { %902 = vst.msk [vmem:[%s1143_s22 + $0x10] sm:$0xff] %vm845_vm14, %v816_v31  ;;  %v869_v34 = vmul.f32 %v816_v31, %v816_v31  ;;  %v849_v35 = vsel %vm845_vm14, %v816_v31, 0.0  ;;  %v880_v44 = vsel %vm845_vm14, %v870_v38, 0.0 }
 0x22e   : > { %v850_v37 = vadd.f32 %v849_v35, %v848_v26 }
 0x22f   : > { %v878_v36 = vsel %vm845_vm14, %v869_v34, 0.0 }
 0x230   : > { %v879_v40 = vadd.f32 %v878_v36, %v877_v29  ;;  %v852_v43 = vadd.f32 %v851_v41, %v850_v37 }
 0x232   : > { %v881_v46 = vadd.f32 %v880_v44, %v879_v40 }
 0x243   : > { %v1057_v32 = vpop.f32.mrf.mxu1 }
 0x244   : > { %905 = vst.msk [vmem:[%s1143_s22 + $0x28] sm:$0xff] %vm845_vm14, %v1057_v32  ;;  %v872_v48 = vmul.f32 %v1057_v32, %v1057_v32  ;;  %v855_v51 = vsel %vm845_vm14, %v1057_v32, 0.0 }
 0x245   : > { %v826_v33 = vpop.f32.mrf.mxu1 }
 0x246   : > { %904 = vst.msk [vmem:[%s1143_s22 + $0x20] sm:$0xff] %vm845_vm14, %v826_v33  ;;  %v871_v39 = vmul.f32 %v826_v33, %v826_v33  ;;  %v853_v42 = vsel %vm845_vm14, %v826_v33, 0.0  ;;  %v884_v54 = vsel %vm845_vm14, %v872_v48, 0.0 }
 0x247   : > { %v854_v47 = vadd.f32 %v853_v42, %v852_v43 }
 0x248   : > { %v882_v45 = vsel %vm845_vm14, %v871_v39, 0.0 }
 0x249   : > { %v883_v49 = vadd.f32 %v882_v45, %v881_v46  ;;  %v856_v53 = vadd.f32 %v855_v51, %v854_v47 }
 0x24b   : > { %v885_v59 = vadd.f32 %v884_v54, %v883_v49 }
 0x256   : > { %v1060_v50 = vpop.f32.mrf.mxu1 }
 0x257   : > { %907 = vst.msk [vmem:[%s1143_s22 + $0x38] sm:$0xff] %vm845_vm14, %v1060_v50  ;;  %v874_v55 = vmul.f32 %v1060_v50, %v1060_v50  ;;  %v859_v60 = vsel %vm845_vm14, %v1060_v50, 0.0 }
 0x258   : > { %v836_v52 = vpop.f32.mrf.mxu1 }
 0x259   : > { %v857_v56 = vsel %vm845_vm14, %v836_v52, 0.0  ;;  %v873_v57 = vmul.f32 %v836_v52, %v836_v52  ;;  %906 = vst.msk [vmem:[%s1143_s22 + $0x30] sm:$0xff] %vm845_vm14, %v836_v52  ;;  %v888_v0 = vsel %vm845_vm14, %v874_v55, 0.0 }
 0x25a   : > { %v858_v58 = vadd.f32 %v857_v56, %v856_v53 }
 0x25b   : > { %v886_v61 = vsel %vm845_vm14, %v873_v57, 0.0 }
 0x25c   : > { %v860_v62 = vadd.f32 %v859_v60, %v858_v58  ;;  %v887_v63 = vadd.f32 %v886_v61, %v885_v59 }
 0x25e   : > { %v861_v1 = vrot.slane %v860_v62, 4  ;;  %v889_v2 = vadd.f32 %v888_v0, %v887_v63 }
 0x260   : > { %v862_v3 = vadd.f32 %v861_v1, %v860_v62  ;;  %v890_v4 = vrot.slane %v889_v2, 4 }
 0x262   : > { %v863_v5 = vrot.slane %v862_v3, 2  ;;  %v891_v6 = vadd.f32 %v890_v4, %v889_v2 }
 0x264   : > { %v864_v7 = vadd.f32 %v863_v5, %v862_v3  ;;  %v892_v8 = vrot.slane %v891_v6, 2 }
 0x266   : > { %v865_v9 = vrot.slane %v864_v7, 1  ;;  %v893_v10 = vadd.f32 %v892_v8, %v891_v6 }
 0x268   : > { %v894_v11 = vrot.slane %v893_v10, 1  ;;  %v866_v12 = vadd.f32 %v865_v9, %v864_v7 }
 0x26a   : > { %v895_v13 = vadd.f32 %v894_v11, %v893_v10 }
 0x26c   : > { %v897_v14 = vsel %vm896_vm15, %v866_v12, %v895_v13 }
 0x26d   : > { %899 = vst.msk [vmem:[%s1148_s26] sm:$0x3] %vm898_vm0, %v897_v14 }
 0x26e PF: > { %s14_s12 = sadd.s32 1, %s1095_s12  }
 0x26f   : > { %p11_p5 = scmp.ge.s32.totalorder %s14_s12, 4  }
 0x271   :  { %13 = sbr.rel (!%p11_p5) target bundleno = 1 (0x1), region = 78 }

// kernel: down_forward.4
= control target key start
LH: loop header
LB: loop body
LE: loop exit
PB: predicated region body
PF: predicated region fallthrough
CT: control target
= control target key end

     0   :  { %s1055_s18 = smov 0   ;;  %s1306_s0 = inlined_call_operand.vmem [shape: f32[2,64,8], index: 0, kind: input, shape index: {}]   ;;  %s1307_s1 = inlined_call_operand.vmem [shape: f32[1,8], index: 1, kind: input, shape index: {}]   ;;  %s1308_s2 = inlined_call_operand.vmem [shape: f32[1,8], index: 2, kind: input, shape index: {}]   ;;  %s1309_s3 = inlined_call_operand.vmem [shape: f32[8,72], index: 3, kind: input, shape index: {}]   ;;  %s1310_s4 = inlined_call_operand.vmem [shape: f32[2,8,64], index: 4, kind: output, shape index: {0}]   ;;  %s1311_s5 = inlined_call_operand.vmem [shape: f32[2,8,2], index: 5, kind: output, shape index: {1}]  }
   0x1 LB: > { %s935_s19 = sadd.s32 4294967295, %s1012_s18   ;;  %p939_p0 = scmp.ge.s32.totalorder %s1012_s18, 1  ;;  %s1012_s18 = sphi %s1055_s18, %s16_s18  }
   0x2   : > { %p190_p1 = scmp.lt.s32.totalorder %s1012_s18, 3 }
   0x4   : > { %p191_p2 = pnand %p939_p0, %p190_p1 }
   0x5   : > { %p221_p3 = scmp.lt.s32.totalorder (!%p191_p2), %s935_s19, 1  ;;  %p944_p4 = scmp.ne.s32.totalorder (!%p191_p2), %s935_s19, 0 }
   0x6   : > { %194 = sbr.rel (%p191_p2) target bundleno = 632 (0x278), region = 36 }
   0xb   : > { %s222_s20 = scalar_select %p221_p3, %s935_s19, 1 }
   0xc   : > { %237 = sbr.rel (%p944_p4) target bundleno = 30 (0x1e), region = 40 }
   0xd   : > { %s958_s21 = sshll.u32 %s222_s20, 6  ;;  %s942_s22 = sshll.u32 %s222_s20, 3 }
   0xe   : > { %s1066_s25 = scalar_lea.vmem %s1306_s0, %s958_s21  ;;  %s1071_s28 = scalar_lea.vmem %s1310_s4, %s942_s22 }
   0xf   : > { %s1076_s6 = scalar_lea.vmem %s1311_s5, %s942_s22 }
  0x11   : > { %vm238_vm0 = vcmask 64512   ;;  %vm240_vm1 = vcmask 58368   ;;  %vm245_vm2 = vcmask 57344   ;;  %v1014_v0 = vmov 0.0  }
  0x12   : > { %239 = vst.msk [vmem:[#allocation2] sm:$0xff] %vm238_vm0, %v1014_v0  ;;  %243 = vst.msk [vmem:[#allocation2 + $0x90] sm:$0xff] %vm238_vm0, %v1014_v0 }
  0x13   : > { %241 = vst.msk [vmem:[#allocation2 + $0x8] sm:$0x3] %vm240_vm1, %v1014_v0  ;;  %244 = vst.msk [vmem:[#allocation2 + $0x98] sm:$0x3] %vm240_vm1, %v1014_v0 }
  0x14   : > { %247 = vst.msk [vmem:[#allocation2 + $0x10] sm:$0x1] %vm245_vm2, %v1014_v0  ;;  %248 = vst.msk [vmem:[#allocation2 + $0x20] sm:$0x1] %vm245_vm2, %v1014_v0 }
  0x15   : > { %249 = vst.msk [vmem:[#allocation2 + $0x30] sm:$0x1] %vm245_vm2, %v1014_v0  ;;  %250 = vst.msk [vmem:[#allocation2 + $0x40] sm:$0x1] %vm245_vm2, %v1014_v0 }
  0x16   : > { %251 = vst.msk [vmem:[#allocation2 + $0x50] sm:$0x1] %vm245_vm2, %v1014_v0  ;;  %252 = vst.msk [vmem:[#allocation2 + $0x60] sm:$0x1] %vm245_vm2, %v1014_v0 }
  0x17   : > { %253 = vst.msk [vmem:[#allocation2 + $0x70] sm:$0x1] %vm245_vm2, %v1014_v0  ;;  %254 = vst.msk [vmem:[#allocation2 + $0x80] sm:$0x1] %vm245_vm2, %v1014_v0 }
  0x18   : > { %257 = vst.msk [vmem:[#allocation2 + $0x19] sm:$0x1] %vm245_vm2, %v1014_v0  ;;  %258 = vst.msk [vmem:[#allocation2 + $0x29] sm:$0x1] %vm245_vm2, %v1014_v0 }
  0x19   : > { %259 = vst.msk [vmem:[#allocation2 + $0x39] sm:$0x1] %vm245_vm2, %v1014_v0  ;;  %260 = vst.msk [vmem:[#allocation2 + $0x49] sm:$0x1] %vm245_vm2, %v1014_v0 }
  0x1a   : > { %261 = vst.msk [vmem:[#allocation2 + $0x59] sm:$0x1] %vm245_vm2, %v1014_v0  ;;  %262 = vst.msk [vmem:[#allocation2 + $0x69] sm:$0x1] %vm245_vm2, %v1014_v0 }
  0x1b   : > { %263 = vst.msk [vmem:[#allocation2 + $0x79] sm:$0x1] %vm245_vm2, %v1014_v0  ;;  %264 = vst.msk [vmem:[#allocation2 + $0x89] sm:$0x1] %vm245_vm2, %v1014_v0 }
  0x1c   : > { %246 = vst.msk [vmem:[#allocation2] sm:$0x1] %vm245_vm2, %v1014_v0  ;;  %255 = vst.msk [vmem:[#allocation2 + $0x90] sm:$0x1] %vm245_vm2, %v1014_v0 }
  0x1d   : > { %256 = vst.msk [vmem:[#allocation2 + $0x9] sm:$0x1] %vm245_vm2, %v1014_v0  ;;  %265 = vst.msk [vmem:[#allocation2 + $0x99] sm:$0x1] %vm245_vm2, %v1014_v0 }
  0x1e PF: > { %v273_v2 = vld [vmem:[%s1066_s25 + $0x38] sm:$0xff]  ;;  %v945_v3 = vld [vmem:[%s1307_s1] ss:$0 sm:$0xff]  ;;  %s1015_s9 = smov 48   ;;  %v272_v6 = vld [vmem:[%s1066_s25 + $0x30] sm:$0xff]  ;;  %vm313_vm3 = vcmask 64512  }
  0x1f   : > { %v288_v4 = vmul.f32 %v945_v3, %v273_v2  ;;  %v946_v5 = vld [vmem:[%s1308_s2] ss:$0 sm:$0xff]  ;;  %v271_v7 = vld [vmem:[%s1066_s25 + $0x28] sm:$0xff]  ;;  %v287_v8 = vmul.f32 %v945_v3, %v272_v6  ;;  %v269_v13 = vld [vmem:[%s1066_s25 + $0x18] sm:$0xff]  ;;  %s1016_s12 = smov 24   ;;  %s1017_s13 = smov 8  }
  0x20   : > { %v286_v9 = vmul.f32 %v945_v3, %v271_v7  ;;  %v270_v10 = vld [vmem:[%s1066_s25 + $0x20] sm:$0xff]  ;;  %v268_v14 = vld [vmem:[%s1066_s25 + $0x10] sm:$0xff]  ;;  %v267_v15 = vld [vmem:[%s1066_s25 + $0x8] sm:$0xff]  ;;  %v284_v18 = vmul.f32 %v945_v3, %v269_v13  ;;  %s1018_s14 = smov 32   ;;  %s1019_s15 = smov 16   ;;  %v1023_v52 = vmov 0.0  }
  0x21   : > { %v303_v11 = vadd.f32 %v946_v5, %v288_v4  ;;  %v285_v12 = vmul.f32 %v945_v3, %v270_v10  ;;  %v302_v16 = vadd.f32 %v946_v5, %v287_v8  ;;  %v283_v19 = vmul.f32 %v945_v3, %v268_v14  ;;  %v266_v20 = vld [vmem:[%s1066_s25] sm:$0xff]  ;;  %s1020_s16 = smov 40   ;;  %v640_v49 = vld [vmem:[#allocation2 + $0x91] sm:$0xff]  ;;  %s1021_s17 = smov 56   ;;  %968 = vmatprep.subr.mxu0 %v1023_v52 }
  0x22   : > { %v301_v17 = vadd.f32 %v946_v5, %v286_v9  ;;  %v282_v23 = vmul.f32 %v945_v3, %v267_v15  ;;  %v281_v24 = vmul.f32 %v945_v3, %v266_v20  ;;  %v299_v27 = vadd.f32 %v946_v5, %v284_v18  ;;  %s1022_s19 = smov 64   ;;  %v338_v0 = vld [vmem:[#allocation2 + $0x1] sm:$0xff] }
  0x23   : > { %v591_v1 = vld [vmem:[#allocation2 + $0x90] sm:$0xff]  ;;  %v311_v21 = vmax.f32 %v303_v11, 0.0  ;;  %v300_v22 = vadd.f32 %v946_v5, %v285_v12  ;;  %v310_v25 = vmax.f32 %v302_v16, 0.0  ;;  %v298_v28 = vadd.f32 %v946_v5, %v283_v19  ;;  %v322_v62 = vld [vmem:[#allocation2] sm:$0xff] }
  0x24   : > { %614 = vrot.lane.b32.xlu1 %v591_v1, %s1015_s9  ;;  %v309_v26 = vmax.f32 %v301_v17, 0.0  ;;  %v297_v30 = vadd.f32 %v946_v5, %v282_v23  ;;  %v296_v31 = vadd.f32 %v946_v5, %v281_v24  ;;  %v307_v32 = vmax.f32 %v299_v27, 0.0  ;;  %v689_v51 = vld [vmem:[#allocation2 + $0x92] sm:$0xff]  ;;  %330 = vst.msk [vmem:[#allocation3] sm:$0xff] %vm313_vm3, %v322_v62  ;;  %v387_v1 = vld [vmem:[#allocation2 + $0x2] sm:$0xff] }
  0x25   : > { %321 = vst.msk [vmem:[#allocation2 + $0x81] sm:$0xff] %vm313_vm3, %v311_v21  ;;  %v308_v29 = vmax.f32 %v300_v22, 0.0  ;;  %320 = vst.msk [vmem:[#allocation2 + $0x71] sm:$0xff] %vm313_vm3, %v310_v25  ;;  %v306_v33 = vmax.f32 %v298_v28, 0.0  ;;  %vm378_vm4 = vcmask 130112   ;;  %vm427_vm5 = vcmask 195712  }
  0x26   : > { %319 = vst.msk [vmem:[#allocation2 + $0x61] sm:$0xff] %vm313_vm3, %v309_v26  ;;  %v305_v34 = vmax.f32 %v297_v30, 0.0  ;;  %v304_v35 = vmax.f32 %v296_v31, 0.0  ;;  %317 = vst.msk [vmem:[#allocation2 + $0x41] sm:$0xff] %vm313_vm3, %v307_v32  ;;  %vm476_vm6 = vcmask 261312   ;;  %vm525_vm7 = vcmask 326912  }
  0x27   : > { %318 = vst.msk [vmem:[#allocation2 + $0x51] sm:$0xff] %vm313_vm3, %v308_v29  ;;  %316 = vst.msk [vmem:[#allocation2 + $0x31] sm:$0xff] %vm313_vm3, %v306_v33  ;;  %vm574_vm8 = vcmask 392512   ;;  %vm624_vm9 = vcmask 458112   ;;  %vm1024_vm10 = vmmov 0   ;;  %vm673_vm11 = vcmask 523712  }
  0x28   : > { %315 = vst.msk [vmem:[#allocation2 + $0x21] sm:$0xff] %vm313_vm3, %v305_v34  ;;  %314 = vst.msk [vmem:[#allocation2 + $0x11] sm:$0xff] %vm313_vm3, %v304_v35  ;;  %984 = vmatprep.mubr.msk.f32.mxu0 %vm1024_vm10, %v1023_v52  ;;  %vm722_vm12 = vcmask 589312   ;;  %vm740_vm13 = vcmask 588800   ;;  %vm838_vm14 = vcmask 523264   ;;  %vm846_vm15 = vcmask 7168  }
  0x29   : > { %vm848_vm0 = vcmask 15360  }
  0x2c   : > { %v443_v36 = vld [vmem:[#allocation2 + $0x80] sm:$0xff]  ;;  %v345_v37 = vld [vmem:[#allocation2 + $0x71] sm:$0xff] }
  0x2d   : > { %466 = vrot.lane.b32.xlu1 %v443_v36, %s1016_s12  ;;  %368 = vrot.lane.b32.xlu0 %v345_v37, %s1017_s13  ;;  %v492_v38 = vld [vmem:[#allocation2 + $0x81] sm:$0xff]  ;;  %v442_v39 = vld [vmem:[#allocation2 + $0x70] sm:$0xff] }
  0x2e   : > { %v394_v40 = vld [vmem:[#allocation2 + $0x72] sm:$0xff]  ;;  %v441_v41 = vld [vmem:[#allocation2 + $0x60] sm:$0xff]  ;;  %337 = vst.msk [vmem:[#allocation3 + $0x38] sm:$0xff] %vm313_vm3, %v442_v39 }
  0x2f   : > { %v1124_v42 = vld [vmem:[#allocation2 + $0x50] sm:$0xff]  ;;  %336 = vst.msk [vmem:[#allocation3 + $0x30] sm:$0xff] %vm313_vm3, %v441_v41  ;;  %v1128_v43 = vld [vmem:[#allocation2 + $0x40] sm:$0xff] }
  0x30   : > { %335 = vst.msk [vmem:[#allocation3 + $0x28] sm:$0xff] %vm313_vm3, %v1124_v42  ;;  %v541_v44 = vld [vmem:[#allocation2 + $0x82] sm:$0xff]  ;;  %v1133_v45 = vld [vmem:[#allocation2 + $0x30] sm:$0xff]  ;;  %334 = vst.msk [vmem:[#allocation3 + $0x20] sm:$0xff] %vm313_vm3, %v1128_v43 }
  0x31   : > { %515 = vrot.lane.b32.xlu1 %v492_v38, %s1018_s14  ;;  %417 = vrot.lane.b32.xlu0 %v394_v40, %s1019_s15  ;;  %v344_v46 = vld [vmem:[#allocation2 + $0x61] sm:$0xff]  ;;  %v1139_v48 = vld [vmem:[#allocation2 + $0x10] sm:$0xff]  ;;  %333 = vst.msk [vmem:[#allocation3 + $0x18] sm:$0xff] %vm313_vm3, %v1133_v45 }
  0x32   : > { %v1137_v47 = vld [vmem:[#allocation2 + $0x20] sm:$0xff]  ;;  %331 = vst.msk [vmem:[#allocation3 + $0x8] sm:$0xff] %vm313_vm3, %v1139_v48  ;;  %v343_v53 = vld [vmem:[#allocation2 + $0x51] sm:$0xff] }
  0x33   : > { %332 = vst.msk [vmem:[#allocation3 + $0x10] sm:$0xff] %vm313_vm3, %v1137_v47  ;;  %v393_v50 = vld [vmem:[#allocation2 + $0x62] sm:$0xff]  ;;  %v392_v54 = vld [vmem:[#allocation2 + $0x52] sm:$0xff] }
  0x34   : > { %v342_v55 = vld [vmem:[#allocation2 + $0x41] sm:$0xff]  ;;  %v341_v57 = vld [vmem:[#allocation2 + $0x31] sm:$0xff] }
  0x35   : > { %564 = vrot.lane.b32.xlu1 %v541_v44, %s1020_s16  ;;  %366 = vrot.lane.b32.xlu0 %v344_v46, %s1017_s13  ;;  %v391_v56 = vld [vmem:[#allocation2 + $0x42] sm:$0xff]  ;;  %v390_v58 = vld [vmem:[#allocation2 + $0x32] sm:$0xff] }
  0x36   : > { %v340_v59 = vld [vmem:[#allocation2 + $0x21] sm:$0xff]  ;;  %v339_v61 = vld [vmem:[#allocation2 + $0x11] sm:$0xff] }
  0x37   : > { %v389_v60 = vld [vmem:[#allocation2 + $0x22] sm:$0xff]  ;;  %v388_v63 = vld [vmem:[#allocation2 + $0x12] sm:$0xff] }
  0x39   : > { %663 = vrot.lane.b32.xlu1 %v640_v49, %s1021_s17  ;;  %415 = vrot.lane.b32.xlu0 %v393_v50, %s1019_s15 }
  0x3d   : > { %712 = vrot.lane.b32.xlu1 %v689_v51, %s1022_s19  ;;  %464 = vrot.lane.b32.xlu0 %v442_v39, %s1016_s12 }
  0x41   : > { %562 = vrot.lane.b32.xlu1 %v394_v40, %s1020_s16  ;;  %513 = vrot.lane.b32.xlu0 %v345_v37, %s1018_s14 }
  0x45   : > { %612 = vrot.lane.b32.xlu1 %v443_v36, %s1015_s9  ;;  %364 = vrot.lane.b32.xlu0 %v343_v53, %s1017_s13 }
  0x49   : > { %661 = vrot.lane.b32.xlu1 %v492_v38, %s1021_s17  ;;  %413 = vrot.lane.b32.xlu0 %v392_v54, %s1019_s15 }
  0x4d   : > { %710 = vrot.lane.b32.xlu1 %v541_v44, %s1022_s19  ;;  %462 = vrot.lane.b32.xlu0 %v441_v41, %s1016_s12 }
  0x51   : > { %560 = vrot.lane.b32.xlu1 %v393_v50, %s1020_s16  ;;  %511 = vrot.lane.b32.xlu0 %v344_v46, %s1018_s14 }
  0x55   : > { %610 = vrot.lane.b32.xlu1 %v442_v39, %s1015_s9  ;;  %362 = vrot.lane.b32.xlu0 %v342_v55, %s1017_s13 }
  0x59   : > { %659 = vrot.lane.b32.xlu1 %v345_v37, %s1021_s17  ;;  %411 = vrot.lane.b32.xlu0 %v391_v56, %s1019_s15 }
  0x5d   : > { %708 = vrot.lane.b32.xlu1 %v394_v40, %s1022_s19  ;;  %460 = vrot.lane.b32.xlu0 %v1124_v42, %s1016_s12 }
  0x61   : > { %558 = vrot.lane.b32.xlu1 %v392_v54, %s1020_s16  ;;  %509 = vrot.lane.b32.xlu0 %v343_v53, %s1018_s14 }
  0x65   : > { %608 = vrot.lane.b32.xlu1 %v441_v41, %s1015_s9  ;;  %360 = vrot.lane.b32.xlu0 %v341_v57, %s1017_s13 }
  0x69   : > { %657 = vrot.lane.b32.xlu1 %v344_v46, %s1021_s17  ;;  %409 = vrot.lane.b32.xlu0 %v390_v58, %s1019_s15 }
  0x6d   : > { %706 = vrot.lane.b32.xlu1 %v393_v50, %s1022_s19  ;;  %458 = vrot.lane.b32.xlu0 %v1128_v43, %s1016_s12 }
  0x71   : > { %556 = vrot.lane.b32.xlu1 %v391_v56, %s1020_s16  ;;  %507 = vrot.lane.b32.xlu0 %v342_v55, %s1018_s14 }
  0x75   : > { %606 = vrot.lane.b32.xlu1 %v1124_v42, %s1015_s9  ;;  %358 = vrot.lane.b32.xlu0 %v340_v59, %s1017_s13 }
  0x79   : > { %655 = vrot.lane.b32.xlu1 %v343_v53, %s1021_s17  ;;  %407 = vrot.lane.b32.xlu0 %v389_v60, %s1019_s15 }
  0x7d   : > { %704 = vrot.lane.b32.xlu1 %v392_v54, %s1022_s19  ;;  %456 = vrot.lane.b32.xlu0 %v1133_v45, %s1016_s12 }
  0x81   : > { %554 = vrot.lane.b32.xlu1 %v390_v58, %s1020_s16  ;;  %505 = vrot.lane.b32.xlu0 %v341_v57, %s1018_s14 }
  0x85   : > { %604 = vrot.lane.b32.xlu1 %v1128_v43, %s1015_s9  ;;  %356 = vrot.lane.b32.xlu0 %v339_v61, %s1017_s13 }
  0x89   : > { %653 = vrot.lane.b32.xlu1 %v342_v55, %s1021_s17  ;;  %405 = vrot.lane.b32.xlu0 %v388_v63, %s1019_s15 }
  0x8d   : > { %702 = vrot.lane.b32.xlu1 %v391_v56, %s1022_s19  ;;  %454 = vrot.lane.b32.xlu0 %v1137_v47, %s1016_s12 }
  0x91   : > { %552 = vrot.lane.b32.xlu1 %v389_v60, %s1020_s16  ;;  %503 = vrot.lane.b32.xlu0 %v340_v59, %s1018_s14 }
  0x95   : > { %602 = vrot.lane.b32.xlu1 %v1133_v45, %s1015_s9  ;;  %354 = vrot.lane.b32.xlu0 %v338_v0, %s1017_s13 }
  0x96   : > { %v615_v2 = vpop.permute.xlu1 %614 }
  0x99   : > { %651 = vrot.lane.b32.xlu1 %v341_v57, %s1021_s17  ;;  %403 = vrot.lane.b32.xlu0 %v387_v1, %s1019_s15 }
  0x9d   : > { %700 = vrot.lane.b32.xlu1 %v390_v58, %s1022_s19  ;;  %452 = vrot.lane.b32.xlu0 %v1139_v48, %s1016_s12 }
  0x9f   : > { %v467_v3 = vpop.permute.xlu1 %466  ;;  %v369_v4 = vpop.permute.xlu0 %368 }
  0xa0   : > { %386 = vst.msk [vmem:[#allocation3 + $0x38] sm:$0xff] %vm378_vm4, %v369_v4 }
  0xa1   : > { %600 = vrot.lane.b32.xlu1 %v1137_v47, %s1015_s9  ;;  %501 = vrot.lane.b32.xlu0 %v339_v61, %s1018_s14 }
  0xa3   : > { %v516_v5 = vpop.permute.xlu1 %515  ;;  %v418_v6 = vpop.permute.xlu0 %417 }
  0xa4   : > { %435 = vst.msk [vmem:[#allocation3 + $0x38] sm:$0xff] %vm427_vm5, %v418_v6 }
  0xa5   : > { %698 = vrot.lane.b32.xlu1 %v389_v60, %s1022_s19  ;;  %484 = vst.msk [vmem:[#allocation3 + $0x38] sm:$0xff] %vm476_vm6, %v467_v3  ;;  %550 = vrot.lane.b32.xlu0 %v388_v63, %s1020_s16 }
  0xa6   : > { %533 = vst.msk [vmem:[#allocation3 + $0x38] sm:$0xff] %vm525_vm7, %v516_v5 }
  0xa7   : > { %v565_v7 = vpop.permute.xlu1 %564  ;;  %v367_v8 = vpop.permute.xlu0 %366 }
  0xa8   : > { %582 = vst.msk [vmem:[#allocation3 + $0x38] sm:$0xff] %vm574_vm8, %v565_v7 }
  0xa9   : > { %385 = vst.msk [vmem:[#allocation3 + $0x30] sm:$0xff] %vm378_vm4, %v367_v8  ;;  %649 = vrot.lane.b32.xlu0 %v340_v59, %s1021_s17 }
  0xaa   : > { %632 = vst.msk [vmem:[#allocation3 + $0x38] sm:$0xff] %vm624_vm9, %v615_v2 }
  0xab   : > { %v664_v9 = vpop.permute.xlu1 %663  ;;  %v416_v10 = vpop.permute.xlu0 %415 }
  0xac   : > { %681 = vst.msk [vmem:[#allocation3 + $0x38] sm:$0xff] %vm673_vm11, %v664_v9 }
  0xad   : > { %434 = vst.msk [vmem:[#allocation3 + $0x30] sm:$0xff] %vm427_vm5, %v416_v10 }
  0xaf   : > { %v713_v11 = vpop.permute.xlu1 %712  ;;  %v465_v12 = vpop.permute.xlu0 %464 }
  0xb0   : > { %730 = vst.msk [vmem:[#allocation3 + $0x38] sm:$0xff] %vm722_vm12, %v713_v11  ;;  %v731_v11 = vld [vmem:[%s1309_s3] sm:$0xff] }
  0xb1   : > { %483 = vst.msk [vmem:[#allocation3 + $0x30] sm:$0xff] %vm476_vm6, %v465_v12 }
  0xb3   : > { %v563_v13 = vpop.permute.xlu1 %562  ;;  %v514_v14 = vpop.permute.xlu0 %513 }
  0xb4   : > { %532 = vst.msk [vmem:[#allocation3 + $0x30] sm:$0xff] %vm525_vm7, %v514_v14 }
  0xb5   : > { %581 = vst.msk [vmem:[#allocation3 + $0x30] sm:$0xff] %vm574_vm8, %v563_v13 }
  0xb7   : > { %v613_v15 = vpop.permute.xlu1 %612  ;;  %v739_v16 = vld [vmem:[#allocation3 + $0x38] sm:$0xff]  ;;  %v365_v17 = vpop.permute.xlu0 %364 }
  0xb8   : > { %631 = vst.msk [vmem:[#allocation3 + $0x30] sm:$0xff] %vm624_vm9, %v613_v15  ;;  %969 = vmatpush3.xpose.msk.msra.mxu0 %vm740_vm13, %v739_v16 }
  0xb9   : > { %384 = vst.msk [vmem:[#allocation3 + $0x28] sm:$0xff] %vm378_vm4, %v365_v17  ;;  %970 = vmatprep.subr.mxu0 %v1023_v52 }
  0xbb   : > { %v662_v18 = vpop.permute.xlu1 %661  ;;  %v414_v19 = vpop.permute.xlu0 %413 }
  0xbc   : > { %680 = vst.msk [vmem:[#allocation3 + $0x30] sm:$0xff] %vm673_vm11, %v662_v18 }
  0xbd   : > { %433 = vst.msk [vmem:[#allocation3 + $0x28] sm:$0xff] %vm427_vm5, %v414_v19 }
  0xbf   : > { %v711_v20 = vpop.permute.xlu1 %710  ;;  %v463_v21 = vpop.permute.xlu0 %462 }
  0xc0   : > { %729 = vst.msk [vmem:[#allocation3 + $0x30] sm:$0xff] %vm722_vm12, %v711_v20 }
  0xc1   : > { %482 = vst.msk [vmem:[#allocation3 + $0x28] sm:$0xff] %vm476_vm6, %v463_v21 }
  0xc3   : > { %v561_v22 = vpop.permute.xlu1 %560  ;;  %v512_v23 = vpop.permute.xlu0 %511 }
  0xc4   : > { %531 = vst.msk [vmem:[#allocation3 + $0x28] sm:$0xff] %vm525_vm7, %v512_v23 }
  0xc5   : > { %580 = vst.msk [vmem:[#allocation3 + $0x28] sm:$0xff] %vm574_vm8, %v561_v22 }
  0xc7   : > { %v611_v24 = vpop.permute.xlu1 %610  ;;  %v738_v25 = vld [vmem:[#allocation3 + $0x30] sm:$0xff]  ;;  %v363_v26 = vpop.permute.xlu0 %362 }
  0xc8   : > { %630 = vst.msk [vmem:[#allocation3 + $0x28] sm:$0xff] %vm624_vm9, %v611_v24  ;;  %971 = vmatpush3.xpose.msk.msra.mxu0 %vm740_vm13, %v738_v25 }
  0xc9   : > { %383 = vst.msk [vmem:[#allocation3 + $0x20] sm:$0xff] %vm378_vm4, %v363_v26  ;;  %972 = vmatprep.subr.mxu0 %v1023_v52 }
  0xcb   : > { %v660_v27 = vpop.permute.xlu1 %659  ;;  %v412_v28 = vpop.permute.xlu0 %411 }
  0xcc   : > { %679 = vst.msk [vmem:[#allocation3 + $0x28] sm:$0xff] %vm673_vm11, %v660_v27 }
  0xcd   : > { %432 = vst.msk [vmem:[#allocation3 + $0x20] sm:$0xff] %vm427_vm5, %v412_v28 }
  0xcf   : > { %v709_v29 = vpop.permute.xlu1 %708  ;;  %v461_v30 = vpop.permute.xlu0 %460 }
  0xd0   : > { %728 = vst.msk [vmem:[#allocation3 + $0x28] sm:$0xff] %vm722_vm12, %v709_v29 }
  0xd1   : > { %481 = vst.msk [vmem:[#allocation3 + $0x20] sm:$0xff] %vm476_vm6, %v461_v30 }
  0xd3   : > { %v559_v31 = vpop.permute.xlu1 %558  ;;  %v510_v32 = vpop.permute.xlu0 %509 }
  0xd4   : > { %530 = vst.msk [vmem:[#allocation3 + $0x20] sm:$0xff] %vm525_vm7, %v510_v32 }
  0xd5   : > { %579 = vst.msk [vmem:[#allocation3 + $0x20] sm:$0xff] %vm574_vm8, %v559_v31 }
  0xd7   : > { %v609_v33 = vpop.permute.xlu1 %608  ;;  %v737_v34 = vld [vmem:[#allocation3 + $0x28] sm:$0xff]  ;;  %v361_v35 = vpop.permute.xlu0 %360 }
  0xd8   : > { %629 = vst.msk [vmem:[#allocation3 + $0x20] sm:$0xff] %vm624_vm9, %v609_v33  ;;  %973 = vmatpush3.xpose.msk.msra.mxu0 %vm740_vm13, %v737_v34 }
  0xd9   : > { %382 = vst.msk [vmem:[#allocation3 + $0x18] sm:$0xff] %vm378_vm4, %v361_v35  ;;  %974 = vmatprep.subr.mxu0 %v1023_v52 }
  0xdb   : > { %v658_v36 = vpop.permute.xlu1 %657  ;;  %v410_v37 = vpop.permute.xlu0 %409 }
  0xdc   : > { %678 = vst.msk [vmem:[#allocation3 + $0x20] sm:$0xff] %vm673_vm11, %v658_v36 }
  0xdd   : > { %431 = vst.msk [vmem:[#allocation3 + $0x18] sm:$0xff] %vm427_vm5, %v410_v37 }
  0xdf   : > { %v707_v38 = vpop.permute.xlu1 %706  ;;  %v459_v39 = vpop.permute.xlu0 %458 }
  0xe0   : > { %727 = vst.msk [vmem:[#allocation3 + $0x20] sm:$0xff] %vm722_vm12, %v707_v38 }
  0xe1   : > { %480 = vst.msk [vmem:[#allocation3 + $0x18] sm:$0xff] %vm476_vm6, %v459_v39 }
  0xe3   : > { %v557_v40 = vpop.permute.xlu1 %556  ;;  %v508_v41 = vpop.permute.xlu0 %507 }
  0xe4   : > { %529 = vst.msk [vmem:[#allocation3 + $0x18] sm:$0xff] %vm525_vm7, %v508_v41 }
  0xe5   : > { %578 = vst.msk [vmem:[#allocation3 + $0x18] sm:$0xff] %vm574_vm8, %v557_v40 }
  0xe7   : > { %v607_v42 = vpop.permute.xlu1 %606  ;;  %v736_v43 = vld [vmem:[#allocation3 + $0x20] sm:$0xff]  ;;  %v359_v44 = vpop.permute.xlu0 %358 }
  0xe8   : > { %628 = vst.msk [vmem:[#allocation3 + $0x18] sm:$0xff] %vm624_vm9, %v607_v42  ;;  %975 = vmatpush3.xpose.msk.msra.mxu0 %vm740_vm13, %v736_v43 }
  0xe9   : > { %381 = vst.msk [vmem:[#allocation3 + $0x10] sm:$0xff] %vm378_vm4, %v359_v44  ;;  %976 = vmatprep.subr.mxu0 %v1023_v52 }
  0xeb   : > { %v656_v45 = vpop.permute.xlu1 %655  ;;  %v408_v46 = vpop.permute.xlu0 %407 }
  0xec   : > { %677 = vst.msk [vmem:[#allocation3 + $0x18] sm:$0xff] %vm673_vm11, %v656_v45 }
  0xed   : > { %430 = vst.msk [vmem:[#allocation3 + $0x10] sm:$0xff] %vm427_vm5, %v408_v46 }
  0xef   : > { %v705_v47 = vpop.permute.xlu1 %704  ;;  %v457_v48 = vpop.permute.xlu0 %456 }
  0xf0   : > { %726 = vst.msk [vmem:[#allocation3 + $0x18] sm:$0xff] %vm722_vm12, %v705_v47 }
  0xf1   : > { %479 = vst.msk [vmem:[#allocation3 + $0x10] sm:$0xff] %vm476_vm6, %v457_v48 }
  0xf3   : > { %v555_v49 = vpop.permute.xlu1 %554  ;;  %v506_v50 = vpop.permute.xlu0 %505 }
  0xf4   : > { %528 = vst.msk [vmem:[#allocation3 + $0x10] sm:$0xff] %vm525_vm7, %v506_v50 }
  0xf5   : > { %577 = vst.msk [vmem:[#allocation3 + $0x10] sm:$0xff] %vm574_vm8, %v555_v49 }
  0xf7   : > { %v605_v51 = vpop.permute.xlu1 %604  ;;  %v735_v53 = vld [vmem:[#allocation3 + $0x18] sm:$0xff]  ;;  %v357_v54 = vpop.permute.xlu0 %356 }
  0xf8   : > { %627 = vst.msk [vmem:[#allocation3 + $0x10] sm:$0xff] %vm624_vm9, %v605_v51  ;;  %977 = vmatpush3.xpose.msk.msra.mxu0 %vm740_vm13, %v735_v53 }
  0xf9   : > { %380 = vst.msk [vmem:[#allocation3 + $0x8] sm:$0xff] %vm378_vm4, %v357_v54  ;;  %978 = vmatprep.subr.mxu0 %v1023_v52 }
  0xfb   : > { %v654_v55 = vpop.permute.xlu1 %653  ;;  %v406_v56 = vpop.permute.xlu0 %405 }
  0xfc   : > { %676 = vst.msk [vmem:[#allocation3 + $0x10] sm:$0xff] %vm673_vm11, %v654_v55 }
  0xfd   : > { %429 = vst.msk [vmem:[#allocation3 + $0x8] sm:$0xff] %vm427_vm5, %v406_v56 }
  0xff   : > { %v703_v57 = vpop.permute.xlu1 %702  ;;  %v455_v58 = vpop.permute.xlu0 %454 }
 0x100   : > { %725 = vst.msk [vmem:[#allocation3 + $0x10] sm:$0xff] %vm722_vm12, %v703_v57 }
 0x101   : > { %478 = vst.msk [vmem:[#allocation3 + $0x8] sm:$0xff] %vm476_vm6, %v455_v58 }
 0x103   : > { %v553_v59 = vpop.permute.xlu1 %552  ;;  %v504_v60 = vpop.permute.xlu0 %503 }
 0x104   : > { %527 = vst.msk [vmem:[#allocation3 + $0x8] sm:$0xff] %vm525_vm7, %v504_v60 }
 0x105   : > { %576 = vst.msk [vmem:[#allocation3 + $0x8] sm:$0xff] %vm574_vm8, %v553_v59 }
 0x107   : > { %v603_v61 = vpop.permute.xlu1 %602  ;;  %v734_v62 = vld [vmem:[#allocation3 + $0x10] sm:$0xff]  ;;  %v355_v63 = vpop.permute.xlu0 %354 }
 0x108   : > { %626 = vst.msk [vmem:[#allocation3 + $0x8] sm:$0xff] %vm624_vm9, %v603_v61  ;;  %979 = vmatpush3.xpose.msk.msra.mxu0 %vm740_vm13, %v734_v62 }
 0x109   : > { %379 = vst.msk [vmem:[#allocation3] sm:$0xff] %vm378_vm4, %v355_v63  ;;  %980 = vmatprep.subr.mxu0 %v1023_v52 }
 0x10b   : > { %v652_v0 = vpop.permute.xlu1 %651  ;;  %v404_v1 = vpop.permute.xlu0 %403 }
 0x10c   : > { %675 = vst.msk [vmem:[#allocation3 + $0x8] sm:$0xff] %vm673_vm11, %v652_v0 }
 0x10d   : > { %428 = vst.msk [vmem:[#allocation3] sm:$0xff] %vm427_vm5, %v404_v1 }
 0x10f   : > { %v701_v2 = vpop.permute.xlu1 %700  ;;  %v453_v3 = vpop.permute.xlu0 %452 }
 0x110   : > { %724 = vst.msk [vmem:[#allocation3 + $0x8] sm:$0xff] %vm722_vm12, %v701_v2 }
 0x111   : > { %477 = vst.msk [vmem:[#allocation3] sm:$0xff] %vm476_vm6, %v453_v3 }
 0x113   : > { %v502_v4 = vpop.permute.xlu0 %501  ;;  %v601_v5 = vpop.permute.xlu1 %600 }
 0x114   : > { %526 = vst.msk [vmem:[#allocation3] sm:$0xff] %vm525_vm7, %v502_v4 }
 0x117   : > { %v733_v6 = vld [vmem:[#allocation3 + $0x8] sm:$0xff]  ;;  %v551_v7 = vpop.permute.xlu0 %550  ;;  %v699_v8 = vpop.permute.xlu1 %698 }
 0x118   : > { %981 = vmatpush3.xpose.msk.msra.mxu0 %vm740_vm13, %v733_v6  ;;  %575 = vst.msk [vmem:[#allocation3] sm:$0xff] %vm574_vm8, %v551_v7 }
 0x119   : > { %982 = vmatprep.subr.mxu0 %v1023_v52  ;;  %625 = vst.msk [vmem:[#allocation3] sm:$0xff] %vm624_vm9, %v601_v5 }
 0x11b   : > { %v650_v9 = vpop.permute.xlu0 %649 }
 0x11c   : > { %674 = vst.msk [vmem:[#allocation3] sm:$0xff] %vm673_vm11, %v650_v9 }
 0x11d   : > { %723 = vst.msk [vmem:[#allocation3] sm:$0xff] %vm722_vm12, %v699_v8 }
 0x124   : > { %v732_v10 = vld [vmem:[#allocation3] sm:$0xff] }
 0x125   : > { %983 = vmatpush3.xpose.msk.msra.mxu0 %vm740_vm13, %v732_v10 }
 0x128   : > { %985 = vmatmul.mubr.msk.f32.vlgmr.msra.gmra.mxu0 %vm740_vm13, %v731_v11 }
 0x1e8   : > { %v834_v52 = vpop.f32.mrf.mxu0 }
 0x1e9   : > { %v839_v12 = vsel %vm838_vm14, %v834_v52, 0.0  ;;  %850 = vst.msk [vmem:[%s1071_s28] sm:$0xff] %vm838_vm14, %v834_v52  ;;  %v842_v13 = vmul.f32 %v834_v52, %v834_v52 }
 0x1ea   : > { %840 = vadd.xlane.f32.xlu0 %v839_v12  ;;  %v986_v14 = vpop.f32.mrf.mxu0 }
 0x1eb   : > { %v843_v15 = vsel %vm838_vm14, %v842_v13, 0.0 }
 0x1ec   : > { %844 = vadd.xlane.f32.xlu1 %v843_v15 }
 0x273   : > { %v841_v16 = vpop.xlane.xlu0 %840 }
 0x275   : > { %v845_v17 = vpop.xlane.xlu1 %844 }
 0x276   : > { %v847_v18 = vsel %vm846_vm15, %v841_v16, %v845_v17 }
 0x277   : > { %849 = vst.msk [vmem:[%s1076_s6] sm:$0xff] %vm848_vm0, %v847_v18 }
 0x278 PF: > { %s16_s18 = sadd.s32 1, %s1012_s18  }
 0x279   : > { %p13_p5 = scmp.ge.s32.totalorder %s16_s18, 4  }
 0x27b   :  { %15 = sbr.rel (!%p13_p5) target bundleno = 1 (0x1), region = 85 }

</bundles_post_ra>
